<compile_context>
chip_gen: v5e
topology: v5e:2x2
jax: 0.10.0
libtpu: 0.0.40
codegen_flags: <defaults>
</compile_context>

<pallas_src>
import functools

import numpy as np
import jax
import jax.numpy as jnp
from jax.experimental import pallas as pl
from jax.experimental.pallas import tpu as pltpu


def pair_emb_kernel(left_ref, right_ref, idx_row_ref, idx_col_ref,
                    templ_ref, wt_ref, ws_ref, out_ref):
    # left_ref   : (1, tl, d_model)      row projection (+ bias folded in)
    # right_ref  : (1, L,  d_model)      column projection
    # idx_row_ref: (1, tl, 1)   float32
    # idx_col_ref: (1, 1,  L)   float32
    # templ_ref  : (1, tl, L, d_templ)
    # wt_ref     : (d_templ, d_model)
    # ws_ref     : (1, d_model)
    # out_ref    : (1, tl, L, d_model)
    tl = out_ref.shape[1]
    L = out_ref.shape[2]
    d_model = out_ref.shape[3]
    d_templ = templ_ref.shape[-1]

    # Template projection on the MXU. The reshape merges only the leading
    # (non-minor) dims; with L % 8 == 0 it is layout-preserving.
    templ_2d = templ_ref[0].reshape(tl * L, d_templ)
    templ_p = jnp.dot(templ_2d, wt_ref[...],
                      preferred_element_type=jnp.float32,
                      precision=jax.lax.Precision.HIGHEST
                      ).reshape(tl, L, d_model)

    # seqsep = log(|idx_i - idx_j| + 1). idx is cast to f32 in the wrapper;
    # exact for |idx| < 2^24 (fine for sequence positions). log runs on the EUP
    # slot, which is free filler next to the MXU/VPU work.
    seqsep = jnp.log(jnp.abs(idx_row_ref[0] - idx_col_ref[0]) + 1.0)   # (tl, L)

    out = (templ_p
           + left_ref[0][:, None, :]                        # (tl, 1, dm)
           + right_ref[0][None, :, :]                       # (1,  L, dm)
           + seqsep[:, :, None] * ws_ref[...][None, :, :])  # (tl, L, 1)*(1,1,dm)
    out_ref[0] = out.astype(out_ref.dtype)


def _pick_row_tile(L, d_templ, d_model, budget_bytes=24 << 20):
    """Largest row tile dividing L, multiple of 8 (or == L), fitting VMEM budget."""
    dt_pad = -(-d_templ // 128) * 128   # lane padding of templ block in VMEM
    dm_pad = -(-d_model // 128) * 128
    best = None
    for tl in range(1, min(L, 256) + 1):
        if L % tl:
            continue
        if tl != L and tl % 8:
            continue
        fp = 2 * tl * L * (dt_pad + dm_pad) * 4   # double-buffered templ + out
        if fp <= budget_bytes:
            best = tl
    if best is None:
        best = 8 if L % 8 == 0 else L
    return best


@functools.partial(jax.jit, static_argnames=("tl",))
def pair_emb_w_templ(seq, idx, templ, emb_table, W, bias, *, tl=None):
    """seq: (B,L) int32; idx: (B,L) int32; templ: (B,L,L,d_templ) f32.
    emb_table: (d_seq, d_emb); W: (d_model, d_in) torch-style; bias: (d_model,)."""
    B, L = seq.shape
    d_templ = templ.shape[-1]
    d_model, d_in = W.shape
    d_emb = emb_table.shape[-1]
    assert d_in == 2 * d_emb + d_templ + 1
    # TODO(synk): pad/mask ragged L; the in-kernel reshapes require L % 8 == 0
    # so row tiles satisfy the sublane rule and stay layout-preserving.
    assert L % 8 == 0, "L must be a multiple of 8"

    if tl is None:
        tl = _pick_row_tile(L, d_templ, d_model)
    assert L % tl == 0 and (tl == L or tl % 8 == 0), f"bad row tile tl={tl} for L={L}"

    hi = jax.lax.Precision.HIGHEST

    # ---- wrapper glue (cheap, O(B*L*d_model)) ----------------------------
    seq_emb = jnp.take(emb_table, seq, axis=0).astype(jnp.float32)     # (B, L, d_emb)
    W_left = W[:, :d_emb].T                                            # (d_emb, d_model)
    W_right = W[:, d_emb:2 * d_emb].T                                  # (d_emb, d_model)
    W_templ = W[:, 2 * d_emb:2 * d_emb + d_templ].T                    # (d_templ, d_model)
    w_sep = W[:, -1:].T                                                # (1, d_model)

    # Hoisted projections: left gets the bias folded in.
    left_proj = jnp.dot(seq_emb, W_left, precision=hi) + bias[None, None, :]   # (B,L,dm)
    right_proj = jnp.dot(seq_emb, W_right, precision=hi)                       # (B,L,dm)

    idx_f = idx.astype(jnp.float32)
    idx_row = idx_f[:, :, None]                                        # (B, L, 1)
    idx_col = idx_f[:, None, :]                                        # (B, 1, L)

    grid = (B, L // tl)

    out = pl.pallas_call(
        pair_emb_kernel,
        out_shape=jax.ShapeDtypeStruct((B, L, L, d_model), jnp.float32),
        grid_spec=pltpu.PrefetchScalarGridSpec(
            num_scalar_prefetch=0,
            grid=grid,
            in_specs=[
                pl.BlockSpec((1, tl, d_model), lambda b, ti: (b, ti, 0)),        # left_proj
                pl.BlockSpec((1, L, d_model), lambda b, ti: (b, 0, 0)),          # right_proj
                pl.BlockSpec((1, tl, 1), lambda b, ti: (b, ti, 0)),              # idx rows
                pl.BlockSpec((1, 1, L), lambda b, ti: (b, 0, 0)),                # idx cols
                pl.BlockSpec((1, tl, L, d_templ), lambda b, ti: (b, ti, 0, 0)),  # templ
                pl.BlockSpec((d_templ, d_model), lambda b, ti: (0, 0)),          # W_templ
                pl.BlockSpec((1, d_model), lambda b, ti: (0, 0)),                # w_sep
            ],
            out_specs=pl.BlockSpec((1, tl, L, d_model), lambda b, ti: (b, ti, 0, 0)),
        ),
        compiler_params=pltpu.CompilerParams(
            dimension_semantics=("parallel", "parallel"),
            vmem_limit_bytes=48 * 1024 * 1024,
        ),
    )(left_proj, right_proj, idx_row, idx_col, templ, W_templ, w_sep)
    return out


def reference(seq, idx, templ, emb_table, W, bias):
    hi = jax.lax.Precision.HIGHEST
    seq_emb = jnp.take(emb_table, seq, axis=0)
    B, L, d_emb = seq_emb.shape
    left = jnp.broadcast_to(seq_emb[:, :, None, :], (B, L, L, d_emb))
    right = jnp.broadcast_to(seq_emb[:, None, :, :], (B, L, L, d_emb))
    seqsep = jnp.log(
        (jnp.abs(idx[:, :, None] - idx[:, None, :]) + 1).astype(jnp.float32))[..., None]
    pair = jnp.concatenate([left, right, templ, seqsep], axis=-1)
    return jnp.dot(pair, W.T, precision=hi) + bias


if __name__ == "__main__":
    # Module-default channel dims (d_model=128, d_seq=21, d_templ=64), small B/L.
    B, L = 2, 16
    d_model, d_seq, d_templ = 128, 21, 64
    d_emb = d_model // 2
    d_in = d_model + d_templ + 1

    key = jax.random.PRNGKey(0)
    k_emb, k_w, k_b, k_seq, k_templ = jax.random.split(key, 5)

    emb_table = jax.random.normal(k_emb, (d_seq, d_emb), dtype=jnp.float32)
    W = jax.random.normal(k_w, (d_model, d_in), dtype=jnp.float32) / np.sqrt(d_in)
    bias = jax.random.normal(k_b, (d_model,), dtype=jnp.float32) * 0.01

    seq = jax.random.randint(k_seq, (B, L), 0, d_seq, dtype=jnp.int32)
    idx = jnp.broadcast_to(jnp.arange(L, dtype=jnp.int32)[None, :], (B, L))
    templ = jax.random.normal(k_templ, (B, L, L, d_templ), dtype=jnp.float32)

    out = pair_emb_w_templ(seq, idx, templ, emb_table, W, bias)
    out = jax.block_until_ready(out)

    ref = jax.block_until_ready(reference(seq, idx, templ, emb_table, W, bias))
    np.testing.assert_allclose(np.asarray(out), np.asarray(ref), rtol=1e-3, atol=1e-3)
    print("KERNEL_OK")
</pallas_src>

<mosaic_0001>
module attributes {stable_mosaic.version = 11 : i64} {
  func.func @pair_emb_kernel(%arg0: i32, %arg1: i32, %arg2: memref<1x16x128xf32, #tpu.memory_space<vmem>>, %arg3: memref<1x16x128xf32, #tpu.memory_space<vmem>>, %arg4: memref<1x16x1xf32, #tpu.memory_space<vmem>>, %arg5: memref<1x1x16xf32, #tpu.memory_space<vmem>>, %arg6: memref<1x16x16x64xf32, #tpu.memory_space<vmem>>, %arg7: memref<64x128xf32, #tpu.memory_space<vmem>>, %arg8: memref<1x128xf32, #tpu.memory_space<vmem>>, %arg9: memref<1x16x16x128xf32, #tpu.memory_space<vmem>>) attributes {dimension_semantics = [#tpu.dimension_semantics<parallel>, #tpu.dimension_semantics<parallel>], iteration_bounds = array<i64: 2, 1>, scalar_prefetch = 0 : i64, scratch_operands = 0 : i64, tpu.core_type = #tpu.core_type<tc>, window_params = [{transform_indices = @transform_0, window_bounds = array<i64: 1, 16, 128>}, {transform_indices = @transform_1, window_bounds = array<i64: 1, 16, 128>}, {transform_indices = @transform_2, window_bounds = array<i64: 1, 16, 1>}, {transform_indices = @transform_3, window_bounds = array<i64: 1, 1, 16>}, {transform_indices = @transform_4, window_bounds = array<i64: 1, 16, 16, 64>}, {pipeline_mode = #tpu.pipeline_mode<synchronous>, transform_indices = @transform_5, window_bounds = array<i64: 64, 128>}, {pipeline_mode = #tpu.pipeline_mode<synchronous>, transform_indices = @transform_6, window_bounds = array<i64: 1, 128>}, {transform_indices = @transform_7, window_bounds = array<i64: 1, 16, 16, 128>}]} {
    %c0 = arith.constant 0 : index
    %c0_0 = arith.constant 0 : index
    %c0_1 = arith.constant 0 : index
    %c0_2 = arith.constant 0 : index
    %0 = vector.load %arg6[%c0, %c0_0, %c0_1, %c0_2] : memref<1x16x16x64xf32, #tpu.memory_space<vmem>>, vector<1x16x16x64xf32>
    %1 = vector.shape_cast %0 : vector<1x16x16x64xf32> to vector<16x16x64xf32>
    %2 = vector.shape_cast %1 : vector<16x16x64xf32> to vector<256x64xf32>
    %c0_3 = arith.constant 0 : index
    %c0_4 = arith.constant 0 : index
    %3 = vector.load %arg7[%c0_3, %c0_4] : memref<64x128xf32, #tpu.memory_space<vmem>>, vector<64x128xf32>
    %cst = arith.constant dense<0.000000e+00> : vector<256x128xf32>
    %4 = tpu.matmul %2, %3, %cst {dimension_numbers = #tpu.dot_dimension_numbers<[1], [0], [0], [1], [0, 0, 1, 1], [], []>, precision = #tpu.contract_precision<fp32>} : vector<256x64xf32>, vector<64x128xf32>, vector<256x128xf32> -> vector<256x128xf32>
    %5 = vector.shape_cast %4 : vector<256x128xf32> to vector<16x16x128xf32>
    %c0_5 = arith.constant 0 : index
    %c0_6 = arith.constant 0 : index
    %c0_7 = arith.constant 0 : index
    %6 = vector.load %arg4[%c0_5, %c0_6, %c0_7] : memref<1x16x1xf32, #tpu.memory_space<vmem>>, vector<1x16x1xf32>
    %7 = vector.shape_cast %6 : vector<1x16x1xf32> to vector<16x1xf32>
    %c0_8 = arith.constant 0 : index
    %c0_9 = arith.constant 0 : index
    %c0_10 = arith.constant 0 : index
    %8 = vector.load %arg5[%c0_8, %c0_9, %c0_10] : memref<1x1x16xf32, #tpu.memory_space<vmem>>, vector<1x1x16xf32>
    %9 = vector.shape_cast %8 : vector<1x1x16xf32> to vector<1x16xf32>
    %10 = vector.broadcast %7 : vector<16x1xf32> to vector<16x16xf32>
    %11 = vector.broadcast %9 : vector<1x16xf32> to vector<16x16xf32>
    %12 = arith.subf %10, %11 : vector<16x16xf32>
    %13 = math.absf %12 : vector<16x16xf32>
    %cst_11 = arith.constant 1.000000e+00 : f32
    %14 = vector.broadcast %cst_11 : f32 to vector<16x16xf32>
    %15 = arith.addf %13, %14 : vector<16x16xf32>
    %16 = math.log %15 : vector<16x16xf32>
    %c0_12 = arith.constant 0 : index
    %c0_13 = arith.constant 0 : index
    %c0_14 = arith.constant 0 : index
    %17 = vector.load %arg2[%c0_12, %c0_13, %c0_14] : memref<1x16x128xf32, #tpu.memory_space<vmem>>, vector<1x16x128xf32>
    %18 = vector.shape_cast %17 : vector<1x16x128xf32> to vector<16x128xf32>
    %19 = vector.shape_cast %18 : vector<16x128xf32> to vector<16x1x128xf32>
    %20 = vector.broadcast %19 : vector<16x1x128xf32> to vector<16x16x128xf32>
    %21 = arith.addf %5, %20 : vector<16x16x128xf32>
    %c0_15 = arith.constant 0 : index
    %c0_16 = arith.constant 0 : index
    %c0_17 = arith.constant 0 : index
    %22 = vector.load %arg3[%c0_15, %c0_16, %c0_17] : memref<1x16x128xf32, #tpu.memory_space<vmem>>, vector<1x16x128xf32>
    %23 = vector.shape_cast %22 : vector<1x16x128xf32> to vector<16x128xf32>
    %24 = vector.shape_cast %23 : vector<16x128xf32> to vector<1x16x128xf32>
    %25 = vector.broadcast %24 : vector<1x16x128xf32> to vector<16x16x128xf32>
    %26 = arith.addf %21, %25 : vector<16x16x128xf32>
    %27 = vector.shape_cast %16 : vector<16x16xf32> to vector<16x16x1xf32>
    %c0_18 = arith.constant 0 : index
    %c0_19 = arith.constant 0 : index
    %28 = vector.load %arg8[%c0_18, %c0_19] : memref<1x128xf32, #tpu.memory_space<vmem>>, vector<1x128xf32>
    %29 = vector.shape_cast %28 : vector<1x128xf32> to vector<1x1x128xf32>
    %30 = vector.broadcast %27 : vector<16x16x1xf32> to vector<16x16x128xf32>
    %31 = vector.broadcast %29 : vector<1x1x128xf32> to vector<16x16x128xf32>
    %32 = arith.mulf %30, %31 : vector<16x16x128xf32>
    %33 = arith.addf %26, %32 : vector<16x16x128xf32>
    %c0_20 = arith.constant 0 : index
    %c0_21 = arith.constant 0 : index
    %c0_22 = arith.constant 0 : index
    %c0_23 = arith.constant 0 : index
    %34 = vector.load %arg9[%c0_20, %c0_21, %c0_22, %c0_23] : memref<1x16x16x128xf32, #tpu.memory_space<vmem>>, vector<1x16x16x128xf32>
    %35 = vector.shape_cast %34 : vector<1x16x16x128xf32> to vector<16x16x128xf32>
    %36 = vector.shape_cast %33 : vector<16x16x128xf32> to vector<1x16x16x128xf32>
    tpu.vector_store %arg9[%c0_20, %c0_21, %c0_22, %c0_23], %36 {strides = array<i32>} : memref<1x16x16x128xf32, #tpu.memory_space<vmem>>, vector<1x16x16x128xf32>,
    return
  }
  func.func @transform_0(%arg0: i32, %arg1: i32) -> (i32, i32, i32) {
    %c0_i32 = arith.constant 0 : i32
    %c0_i32_0 = arith.constant 0 : i32
    return %arg0, %arg1, %c0_i32 : i32, i32, i32
  }
  func.func @transform_1(%arg0: i32, %arg1: i32) -> (i32, i32, i32) {
    %c0_i32 = arith.constant 0 : i32
    %c0_i32_0 = arith.constant 0 : i32
    %c0_i32_1 = arith.constant 0 : i32
    return %arg0, %c0_i32, %c0_i32_0 : i32, i32, i32
  }
  func.func @transform_2(%arg0: i32, %arg1: i32) -> (i32, i32, i32) {
    %c0_i32 = arith.constant 0 : i32
    %c0_i32_0 = arith.constant 0 : i32
    return %arg0, %arg1, %c0_i32 : i32, i32, i32
  }
  func.func @transform_3(%arg0: i32, %arg1: i32) -> (i32, i32, i32) {
    %c0_i32 = arith.constant 0 : i32
    %c0_i32_0 = arith.constant 0 : i32
    %c0_i32_1 = arith.constant 0 : i32
    return %arg0, %c0_i32, %c0_i32_0 : i32, i32, i32
  }
  func.func @transform_4(%arg0: i32, %arg1: i32) -> (i32, i32, i32, i32) {
    %c0_i32 = arith.constant 0 : i32
    %c0_i32_0 = arith.constant 0 : i32
    %c0_i32_1 = arith.constant 0 : i32
    return %arg0, %arg1, %c0_i32, %c0_i32_0 : i32, i32, i32, i32
  }
  func.func @transform_5(%arg0: i32, %arg1: i32) -> (i32, i32) {
    %c0_i32 = arith.constant 0 : i32
    %c0_i32_0 = arith.constant 0 : i32
    %c0_i32_1 = arith.constant 0 : i32
    return %c0_i32, %c0_i32_0 : i32, i32
  }
  func.func @transform_6(%arg0: i32, %arg1: i32) -> (i32, i32) {
    %c0_i32 = arith.constant 0 : i32
    %c0_i32_0 = arith.constant 0 : i32
    %c0_i32_1 = arith.constant 0 : i32
    return %c0_i32, %c0_i32_0 : i32, i32
  }
  func.func @transform_7(%arg0: i32, %arg1: i32) -> (i32, i32, i32, i32) {
    %c0_i32 = arith.constant 0 : i32
    %c0_i32_0 = arith.constant 0 : i32
    %c0_i32_1 = arith.constant 0 : i32
    return %arg0, %arg1, %c0_i32, %c0_i32_0 : i32, i32, i32, i32
  }
}

</mosaic_0001>

<bundles_post_ra>
// kernel: pair_emb_w_templ.1
= control target key start
LH: loop header
LB: loop body
LE: loop exit
PB: predicated region body
PF: predicated region fallthrough
CT: control target
= control target key end

     0   :  { %12 = vsyncpa [#allocation3], 0  ;;  %s3857_s0 = inlined_call_operand.vmem [shape: f32[2,16,128], index: 0, kind: input, shape index: {}]   ;;  %s3858_s1 = inlined_call_operand.vmem [shape: f32[2,16,128], index: 1, kind: input, shape index: {}]   ;;  %s3859_s2 = inlined_call_operand.vmem [shape: f32[2,16,1], index: 2, kind: input, shape index: {}]   ;;  %s3860_s3 = inlined_call_operand.vmem [shape: f32[2,1,16], index: 3, kind: input, shape index: {}]   ;;  %s3861_s4 = inlined_call_operand.hbm [shape: f32[2,16,16,64], index: 4, kind: input, shape index: {}]   ;;  %s3862_s5 = inlined_call_operand.vmem [shape: f32[64,128], index: 5, kind: input, shape index: {}]   ;;  %s3863_s6 = inlined_call_operand.vmem [shape: f32[1,128], index: 6, kind: input, shape index: {}]   ;;  %s3864_s7 = inlined_call_operand.hbm [shape: f32[2,16,16,128], index: 7, kind: output, shape index: {}]  }
   0x1   :  { %14 = vsyncpa [#allocation3 + $0x1], 0 }
   0x2   :  { %15 = vsyncpa [#allocation4], 0 }
   0x3   :  { %17 = vsyncpa [#allocation4 + $0x1], 0  ;;  %s2673_s24 = smov 0   ;;  %s2675_s25 = smov 0  }
   0x4   :  { %s2677_s26 = smov 0   ;;  %s2679_s27 = smov 0  }
   0x5   :  { %s2681_s28 = smov 0   ;;  %s2683_s29 = smov 0  }
   0x6 LB: > { %3932 = sst [smem:[#allocation8_spill]] %s2622_s28  ;;  %s2374_s30 = sadd.s32 4294967295, %s2626_s29   ;;  %s2626_s29 = sphi %s2683_s29, %s23_s29   ;;  %s2622_s28 = sphi %s2681_s28, %s4034_s28   ;;  %s2618_s27 = sphi %s2679_s27, %s4033_s27   ;;  %s2614_s26 = sphi %s2677_s26, %s4037_s26   ;;  %s2610_s25 = sphi %s2675_s25, %s4036_s25   ;;  %s2606_s24 = sphi %s2673_s24, %s4035_s24  }
   0x7   : > { %s2375_s8 = sadd.s32 4294967294, %s2626_s29   ;;  %s35_s9 = sadd.s32 1, %s2622_s28 }
   0x8   : > { %s152_s10 = sadd.s32 1, %s2614_s26  ;;  %p37_p0 = scmp.ge.s32.totalorder %s35_s9, 2 }
   0x9   : > { %p159_p1 = scmp.ne.s32.totalorder %s2614_s26, %s2610_s25  ;;  %p160_p2 = scmp.eq.s32.totalorder %s2626_s29, 0 }
   0xa   : > { %p165_p3 = scmp.ne.s32.totalorder %s2610_s25, %s2606_s24  ;;  %s4039_s9 = smov (%p37_p0, %s35_s9), 0 }
   0xb   : > { %3933 = sst [smem:[#allocation9_spill]] %s4039_s9  ;;  %p2714_p4 = por %p160_p2, %p159_p1 }
   0xc   : > { %p166_p5 = scmp.eq.s32.totalorder %s2374_s30, 0  ;;  %s147_s12 = ssub.s32 %s2622_s28, %s4039_s9 }
   0xd   : > { %p233_p6 = scmp.eq.s32.totalorder %s2374_s30, 1  ;;  %p150_p7 = scmp.eq.s32.totalorder %s147_s12, 0 }
   0xe   : > { %p2720_p8 = por %p166_p5, %p165_p3  ;;  %p239_p10 = scmp.eq.s32.totalorder %s2375_s8, 1 }
   0xf   : > { %p2724_p9 = por %p233_p6, %p159_p1  ;;  %p2377_p12 = scmp.ge.s32.totalorder %s2626_s29, 2 }
  0x10   : > { %s2729_s15 = scalar_select %p150_p7, %s2614_s26, %s152_s10  }
  0x11   : > { %p2731_p11 = por %p239_p10, %p165_p3  ;;  %p2428_p13 = scmp.lt.s32.totalorder %s2626_s29, 2 }
  0x12   : > { %s305_s17 = sand.u32 1, %s2614_s26   ;;  %s2395_s19 = sshll.u32 %s2622_s28, 8 }
  0x13   : > { %s2378_s18 = sshll.u32 %s305_s17, 8  ;;  %s317_s22 = scalar_lea.hbm %s3861_s4, %s2395_s19 }
  0x14   : > { %s309_s23 = scalar_lea.vmem [#allocation2], %s2378_s18  ;;  %s318_s12 = sshll.u32 %s317_s22, 4  ;;  %s319_s12 = int_to_ptr.hbm [resolvable:$true] %s318_s12 }
  0x15   : > { %s320_s30 = sshll.u32 %s309_s23, 4  ;;  %p2421_p0 = pnand %p2428_p13, %p2714_p4  ;;  %s321_s30 = int_to_ptr.vmem [resolvable:$true] %s320_s30 }
  0x16   : > { %p2381_p1 = scmp.ge.s32.totalorder %s2626_s29, 1  ;;  %s306_s8 = scalar_lea.sflag [#allocation3], %s305_s17 }
  0x17   : > { %s2628_s10 = smov 128   ;;  %s2629_s9 = smov 8  }
  0x18   : > { %2423 = dma.hbm_to_vmem [thread:$0]  (!%p2421_p0), %s319_s12, 4096, %s321_s30, %s306_s8, %s2628_s10, %s2628_s10, %s2629_s9  }
  0x19   : > { %p328_p2 = scmp.lt.s32.totalorder %s2626_s29, 3 }
  0x1b   : > { %p329_p3 = pnand %p2381_p1, %p328_p2 }
  0x1d   : > { %332 = sbr.rel (%p329_p3) target bundleno = 591 (0x24f), region = 48 }
  0x22   : > { %s2747_s28 = sand.u32 1, %s2610_s25  }
  0x23   : > { %s2382_s18 = sshll.u32 %s2747_s28, 8  ;;  %s335_s19 = scalar_lea.sflag [#allocation3], %s2747_s28 }
  0x24   : > { %s2753_s11 = scalar_lea.vmem [#allocation2], %s2382_s18 }
  0x25   : > { %2597 = dma.done.wait (%p2720_p8), %s335_s19, 4096  }
  0x26   : > { %2599 = vsyncadd (%p2720_p8), %s335_s19, 4294963200  ;;  %p397_p4 = scmp.lt.s32.totalorder %s2618_s27, 1  ;;  %v2630_v0 = vmov 0   ;;  %v465_v2 = vld [vmem:[%s3862_s5 + $0x38] sm:$0xff]  ;;  %v464_v4 = vld [vmem:[%s3862_s5 + $0x30] sm:$0xff]  ;;  %vm466_vm0 = vcmask 523264  }
  0x27   : > { %2483 = vset.pattern.permute.xlu0 %v2630_v0  ;;  %v2776_v3 = vand.u32 4294901760, %v465_v2  ;;  %v463_v5 = vld [vmem:[%s3862_s5 + $0x28] sm:$0xff]  ;;  %v462_v6 = vld [vmem:[%s3862_s5 + $0x20] sm:$0xff]  ;;  %v2787_v7 = vand.u32 4294901760, %v464_v4  ;;  %v461_v10 = vld [vmem:[%s3862_s5 + $0x18] sm:$0xff] }
  0x28   : > { %s2761_s9 = scalar_select %p397_p4, %s2618_s27, 1  ;;  %v2789_v8 = vand.u32 4294901760, %v463_v5  ;;  %v2791_v9 = vand.u32 4294901760, %v462_v6  ;;  %v460_v11 = vld [vmem:[%s3862_s5 + $0x10] sm:$0xff]  ;;  %v459_v12 = vld [vmem:[%s3862_s5 + $0x8] sm:$0xff]  ;;  %v2803_v13 = vand.u32 4294901760, %v461_v10 }
  0x29   : > { %2400 = vmatpush.msra.mxu2 %v2776_v3  ;;  %v2806_v14 = vsub.f32 %v465_v2, %v2776_v3  ;;  %v2808_v15 = vand.u32 4294901760, %v460_v11  ;;  %v2810_v16 = vand.u32 4294901760, %v459_v12  ;;  %v458_v17 = vld [vmem:[%s3862_s5] sm:$0xff]  ;;  %572 = vmatpush.msra.mxu0 %v2776_v3  ;;  %v2818_v19 = vsub.f32 %v464_v4, %v2787_v7  ;;  %v443_v40 = vld [vmem:[%s2753_s11 + $0x88] sm:$0xff]  ;;  %v444_v42 = vld [vmem:[%s2753_s11 + $0x90] sm:$0xff] }
  0x2a   : > { %s2764_s17 = sshll.u32 %s2761_s9, 4  ;;  %v442_v18 = vld [vmem:[%s2753_s11 + $0x80] sm:$0xff]  ;;  %v2821_v20 = vsub.f32 %v463_v5, %v2789_v8  ;;  %v2823_v21 = vand.u32 4294901760, %v458_v17  ;;  %v2826_v22 = vsub.f32 %v462_v6, %v2791_v9  ;;  %s423_s13 = scalar_lea.vmem %s3860_s3, %s2761_s9  ;;  %v2836_v25 = vsub.f32 %v461_v10, %v2803_v13  ;;  %v427_v50 = vld [vmem:[%s2753_s11 + $0x8] sm:$0xff]  ;;  %v428_v59 = vld [vmem:[%s2753_s11 + $0x10] sm:$0xff] }
  0x2b   : > { %s2770_s22 = scalar_lea.vmem %s3859_s2, %s2764_s17  ;;  %2401 = vmatpush.msra.mxu2 %v2787_v7  ;;  %v854_v23 = vand.u32 4294901760, %v2806_v14  ;;  %v516_v24 = vsel %vm466_vm0, %v442_v18, 0  ;;  %574 = vmatpush.msra.mxu0 %v2787_v7  ;;  %v2840_v26 = vsub.f32 %v460_v11, %v2808_v15  ;;  %v860_v27 = vand.u32 4294901760, %v2818_v19  ;;  %v426_v41 = vld [vmem:[%s2753_s11] sm:$0xff]  ;;  %v445_v5 = vld [vmem:[%s2753_s11 + $0x98] sm:$0xff]  ;;  %s3551_s30 = scalar_lea.vmem %s3857_s0, %s2764_s17 }
  0x2c   : > { %v1761_v1 = vld [vmem:[%s2770_s22] sm:$0xff]  ;;  %v866_v28 = vand.u32 4294901760, %v2821_v20  ;;  %v872_v29 = vand.u32 4294901760, %v2826_v22  ;;  %v2845_v30 = vand.u32 4294901760, %v516_v24  ;;  %v878_v32 = vand.u32 4294901760, %v2836_v25  ;;  %s3567_s10 = scalar_lea.vmem %s3858_s1, %s2764_s17  ;;  %s3591_s17 = scalar_lea.vmem [#allocation5], %s2382_s18 }
  0x2d   : > { %1766 = vperm.xlu0 %2483, %v1761_v1   ;;  %2402 = vmatpush.msra.mxu2 %v2789_v8  ;;  %v855_v31 = vsub.f32 %v2806_v14, %v854_v23  ;;  %v884_v33 = vand.u32 4294901760, %v2840_v26  ;;  %v2855_v34 = vsub.f32 %v459_v12, %v2810_v16  ;;  %v861_v35 = vsub.f32 %v2818_v19, %v860_v27  ;;  %s2227_s9 = sshll.u32 %s3591_s17, 4  ;;  %s2564_s18 = scalar_lea.hbm %s3864_s7, 512  ;;  %s2228_s9 = int_to_ptr.vmem [resolvable:$true] %s2227_s9 }
  0x2e   : > { %576 = vmatpush.msra.mxu0 %v2789_v8  ;;  %v867_v36 = vsub.f32 %v2821_v20, %v866_v28  ;;  %v2864_v37 = vsub.f32 %v516_v24, %v2845_v30  ;;  %v873_v39 = vsub.f32 %v2826_v22, %v872_v29  ;;  %v879_v47 = vsub.f32 %v2836_v25, %v878_v32 }
  0x2f   : > { %2403 = vmatpush.msra.mxu2 %v2791_v9  ;;  %v856_v38 = vand.u32 4294901760, %v855_v31  ;;  %v862_v43 = vand.u32 4294901760, %v861_v35  ;;  %v890_v45 = vand.u32 4294901760, %v2855_v34  ;;  %v885_v48 = vsub.f32 %v2840_v26, %v884_v33 }
  0x30   : > { %578 = vmatpush.msra.mxu0 %v2791_v9  ;;  %v3875_v44 = vand.u32 4294901760, %v2864_v37  ;;  %v868_v46 = vand.u32 4294901760, %v867_v36  ;;  %v2884_v49 = vsub.f32 %v458_v17, %v2823_v21  ;;  %v519_v52 = vsel %vm466_vm0, %v443_v40, 0 }
  0x31   : > { %2404 = vmatpush.msra.mxu2 %v2803_v13  ;;  %2408 = vmatpush.msra.mxu3 %v856_v38  ;;  %v468_v53 = vsel %vm466_vm0, %v426_v41, 0  ;;  %v522_v54 = vsel %vm466_vm0, %v444_v42, 0  ;;  %v874_v55 = vand.u32 4294901760, %v873_v39  ;;  %v2896_v57 = vand.u32 4294901760, %v519_v52 }
  0x32   : > { %v718_v51 = vsub.f32 %v2864_v37, %v3875_v44  ;;  %857 = vmatpush.msra.mxu1 %v856_v38  ;;  %580 = vmatpush.msra.mxu0 %v2803_v13  ;;  %v896_v56 = vand.u32 4294901760, %v2884_v49  ;;  %v2898_v58 = vand.u32 4294901760, %v468_v53  ;;  %v891_v61 = vsub.f32 %v2855_v34, %v890_v45 }
  0x33   : > { %2405 = vmatpush.msra.mxu2 %v2808_v15  ;;  %2409 = vmatpush.msra.mxu3 %v862_v43  ;;  %v2905_v62 = vand.u32 4294901760, %v522_v54  ;;  %v471_v63 = vsel %vm466_vm0, %v427_v50, 0  ;;  %v880_v0 = vand.u32 4294901760, %v879_v47  ;;  %v2910_v1 = vsub.f32 %v519_v52, %v2896_v57 }
  0x34   : > { %v719_v60 = vand.u32 4294901760, %v718_v51  ;;  %863 = vmatpush.msra.mxu1 %v862_v43  ;;  %582 = vmatpush.msra.mxu0 %v2808_v15  ;;  %v2913_v2 = vsub.f32 %v468_v53, %v2898_v58  ;;  %v2915_v4 = vand.u32 4294901760, %v471_v63  ;;  %v886_v6 = vand.u32 4294901760, %v885_v48  ;;  %v429_v43 = vld [vmem:[%s2753_s11 + $0x18] sm:$0xff] }
  0x35   : > { %2406 = vmatpush.msra.mxu2 %v2810_v16  ;;  %2410 = vmatpush.msra.mxu3 %v868_v46  ;;  %v474_v10 = vsel %vm466_vm0, %v428_v59, 0  ;;  %v897_v11 = vsub.f32 %v2884_v49, %v896_v56  ;;  %v3874_v12 = vand.u32 4294901760, %v2910_v1  ;;  %v892_v24 = vand.u32 4294901760, %v891_v61  ;;  %v430_v59 = vld [vmem:[%s2753_s11 + $0x20] sm:$0xff] }
  0x36   : > { %869 = vmatpush.msra.mxu1 %v868_v46  ;;  %584 = vmatpush.msra.mxu0 %v2810_v16  ;;  %v3888_v17 = vand.u32 4294901760, %v2913_v2  ;;  %v2927_v18 = vsub.f32 %v471_v63, %v2915_v4  ;;  %v2930_v31 = vsub.f32 %v522_v54, %v2905_v62  ;;  %v525_v35 = vsel %vm466_vm0, %v445_v5, 0 }
  0x37   : > { %2407 = vmatpush.msra.mxu2 %v2823_v21  ;;  %2411 = vmatpush.msra.mxu3 %v874_v55  ;;  %v726_v36 = vsub.f32 %v2910_v1, %v3874_v12  ;;  %v2941_v40 = vand.u32 4294901760, %v474_v10  ;;  %v898_v41 = vand.u32 4294901760, %v897_v11  ;;  %v2949_v48 = vand.u32 4294901760, %v525_v35 }
  0x38   : > { %720 = vmatmul.f32.vlgmr.msra.gmra.mxu2 %v719_v60  ;;  %875 = vmatpush.msra.mxu1 %v874_v55  ;;  %v590_v38 = vsub.f32 %v2913_v2, %v3888_v17  ;;  %v3887_v39 = vand.u32 4294901760, %v2927_v18  ;;  %v3873_v47 = vand.u32 4294901760, %v2930_v31 }
  0x39   : > { %2412 = vmatpush.msra.mxu3 %v880_v0  ;;  %1039 = vmatpush.msrb.mxu2 %v2806_v14  ;;  %v727_v46 = vand.u32 4294901760, %v726_v36  ;;  %v2955_v51 = vsub.f32 %v474_v10, %v2941_v40  ;;  %v446_v14 = vld [vmem:[%s2753_s11 + $0xa0] sm:$0xff]  ;;  %v2967_v53 = vsub.f32 %v525_v35, %v2949_v48  ;;  %v1762_v36 = vld [vmem:[%s2770_s22 + $0x8] sm:$0xff] }
  0x3a   : > { %881 = vmatpush.msra.mxu1 %v880_v0  ;;  %586 = vmatpush.msra.mxu0 %v2823_v21  ;;  %v591_v42 = vand.u32 4294901760, %v590_v38  ;;  %v598_v50 = vsub.f32 %v2927_v18, %v3887_v39  ;;  %v734_v52 = vsub.f32 %v2930_v31, %v3873_v47  ;;  %v528_v54 = vsel %vm466_vm0, %v446_v14, 0  ;;  %v449_v14 = vld [vmem:[%s2753_s11 + $0xb8] sm:$0xff] }
  0x3b   : > { %2413 = vmatpush.msra.mxu3 %v886_v6  ;;  %1042 = vmatpush.msrb.mxu2 %v2818_v19  ;;  %v3872_v61 = vand.u32 4294901760, %v2967_v53  ;;  %v2981_v63 = vand.u32 4294901760, %v528_v54  ;;  %v480_v0 = vsel %vm466_vm0, %v430_v59, 0  ;;  %v433_v59 = vld [vmem:[%s2753_s11 + $0x38] sm:$0xff] }
  0x3c   : > { %1450 = vmatpush.msrb.mxu0 %v854_v23  ;;  %887 = vmatpush.msra.mxu1 %v886_v6  ;;  %v477_v23 = vsel %vm466_vm0, %v429_v43, 0  ;;  %v599_v19 = vand.u32 4294901760, %v598_v50  ;;  %v735_v60 = vand.u32 4294901760, %v734_v52  ;;  %v3009_v10 = vand.u32 4294901760, %v480_v0 }
  0x3d   : > { %2414 = vmatpush.msra.mxu3 %v892_v24  ;;  %592 = vmatmul.f32.vlgmr.msra.gmra.mxu0 %v591_v42  ;;  %v2972_v55 = vand.u32 4294901760, %v477_v23 }
  0x3e   : > { %893 = vmatpush.msra.mxu1 %v892_v24  ;;  %1454 = vmatpush.msrb.mxu0 %v860_v27  ;;  %v3885_v27 = vand.u32 4294901760, %v2955_v51  ;;  %v3028_v24 = vsub.f32 %v480_v0, %v3009_v10 }
  0x3f   : > { %2415 = vmatpush.msra.mxu3 %v898_v41  ;;  %1045 = vmatpush.msrb.mxu2 %v2821_v20 }
  0x40   : > { %728 = vmatmul.f32.gmra.mxu2 %v727_v46  ;;  %965 = vmatmul.f32.vlgmr.msra.gmra.mxu3 %v2845_v30  ;;  %v606_v20 = vsub.f32 %v2955_v51, %v3885_v27 }
  0x41   : > { %1231 = vmatpush.msrb.mxu3 %v2776_v3  ;;  %899 = vmatpush.msra.mxu1 %v898_v41  ;;  %v432_v41 = vld [vmem:[%s2753_s11 + $0x30] sm:$0xff] }
  0x42   : > { %901 = vmatmul.f32.vlgmr.msra.gmra.mxu1 %v2898_v58  ;;  %1458 = vmatpush.msrb.mxu0 %v866_v28  ;;  %v447_v28 = vld [vmem:[%s2753_s11 + $0xa8] sm:$0xff] }
  0x43   : > { %1617 = vmatpush.msrb.mxu1 %v2776_v3  ;;  %1233 = vmatpush.msrb.mxu3 %v2787_v7  ;;  %v2991_v3 = vsub.f32 %v477_v23, %v2972_v55  ;;  %v531_v6 = vsel %vm466_vm0, %v447_v28, 0 }
  0x44   : > { %1048 = vmatpush.msrb.mxu2 %v2826_v22  ;;  %1462 = vmatpush.msrb.mxu0 %v872_v29  ;;  %v3005_v22 = vsub.f32 %v528_v54, %v2981_v63  ;;  %v607_v29 = vand.u32 4294901760, %v606_v20  ;;  %v3019_v11 = vand.u32 4294901760, %v531_v6 }
  0x45   : > { %600 = vmatmul.f32.gmra.mxu0 %v599_v19  ;;  %1619 = vmatpush.msrb.mxu1 %v2787_v7  ;;  %v742_v7 = vsub.f32 %v2967_v53, %v3872_v61  ;;  %v3884_v5 = vand.u32 4294901760, %v2991_v3  ;;  %v537_v19 = vsel %vm466_vm0, %v449_v14, 0  ;;  %v451_v14 = vld [vmem:[%s2753_s11 + $0xc8] sm:$0xff] }
  0x46   : > { %1235 = vmatpush.msrb.mxu3 %v2789_v8  ;;  %1051 = vmatpush.msrb.mxu2 %v2836_v25  ;;  %v3082_v28 = vand.u32 4294901760, %v537_v19 }
  0x47   : > { %1621 = vmatpush.msrb.mxu1 %v2789_v8  ;;  %1466 = vmatpush.msrb.mxu0 %v878_v32  ;;  %v431_v8 = vld [vmem:[%s2753_s11 + $0x28] sm:$0xff]  ;;  %v743_v25 = vand.u32 4294901760, %v742_v7  ;;  %v3870_v32 = vand.u32 4294901760, %v3005_v22 }
  0x48   : > { %736 = vmatmul.f32.gmra.mxu2 %v735_v60  ;;  %969 = vmatmul.f32.gmra.mxu3 %v2896_v57  ;;  %v483_v35 = vsel %vm466_vm0, %v431_v8, 0  ;;  %3939 = vst [vmem:[#allocation11_spill] sm:$0xff] %v3082_v28 }
  0x49   : > { %1237 = vmatpush.msrb.mxu3 %v2791_v9  ;;  %1623 = vmatpush.msrb.mxu1 %v2791_v9  ;;  %v614_v9 = vsub.f32 %v2991_v3, %v3884_v5  ;;  %v3048_v38 = vand.u32 4294901760, %v483_v35 }
  0x4a   : > { %905 = vmatmul.f32.gmra.mxu1 %v2915_v4  ;;  %1054 = vmatpush.msrb.mxu2 %v2840_v26  ;;  %v750_v26 = vsub.f32 %v3005_v22, %v3870_v32 }
  0x4b   : > { %1239 = vmatpush.msrb.mxu3 %v2803_v13  ;;  %1625 = vmatpush.msrb.mxu1 %v2803_v13  ;;  %v448_v13 = vld [vmem:[%s2753_s11 + $0xb0] sm:$0xff]  ;;  %v3064_v50 = vsub.f32 %v483_v35, %v3048_v38 }
  0x4c   : > { %1470 = vmatpush.msrb.mxu0 %v884_v33  ;;  %1057 = vmatpush.msrb.mxu2 %v2855_v34  ;;  %v3043_v33 = vsub.f32 %v531_v6, %v3019_v11  ;;  %v3883_v34 = vand.u32 4294901760, %v3028_v24  ;;  %v751_v42 = vand.u32 4294901760, %v750_v26  ;;  %v489_v6 = vsel %vm466_vm0, %v433_v59, 0 }
  0x4d   : > { %608 = vmatmul.f32.gmra.mxu0 %v607_v29  ;;  %1241 = vmatpush.msrb.mxu3 %v2808_v15  ;;  %v3881_v52 = vand.u32 4294901760, %v3064_v50  ;;  %v450_v29 = vld [vmem:[%s2753_s11 + $0xc0] sm:$0xff]  ;;  %v3101_v26 = vand.u32 4294901760, %v489_v6 }
  0x4e   : > { %1627 = vmatpush.msrb.mxu1 %v2808_v15  ;;  %1474 = vmatpush.msrb.mxu0 %v890_v45  ;;  %v615_v15 = vand.u32 4294901760, %v614_v9  ;;  %v534_v45 = vsel %vm466_vm0, %v448_v13, 0  ;;  %v3869_v43 = vand.u32 4294901760, %v3043_v33  ;;  %v540_v35 = vsel %vm466_vm0, %v450_v29, 0  ;;  %v435_v29 = vld [vmem:[%s2753_s11 + $0x48] sm:$0xff] }
  0x4f   : > { %1243 = vmatpush.msrb.mxu3 %v2810_v16  ;;  %1060 = vmatpush.msrb.mxu2 %v2884_v49  ;;  %v3058_v46 = vand.u32 4294901760, %v534_v45  ;;  %v486_v49 = vsel %vm466_vm0, %v432_v41, 0  ;;  %v630_v0 = vsub.f32 %v3064_v50, %v3881_v52  ;;  %v3106_v41 = vand.u32 4294901760, %v540_v35 }
  0x50   : > { %744 = vmatmul.f32.gmra.mxu2 %v743_v25  ;;  %973 = vmatmul.f32.gmra.mxu3 %v2905_v62  ;;  %v3077_v54 = vand.u32 4294901760, %v486_v49  ;;  %v3097_v25 = vsub.f32 %v537_v19, %v3082_v28 }
  0x51   : > { %1771 = vperm.xlu0 %2483, %v1762_v36   ;;  %1629 = vmatpush.msrb.mxu1 %v2810_v16  ;;  %3938 = vst [vmem:[#allocation10_spill] sm:$0xff] %v3058_v46  ;;  %v622_v16 = vsub.f32 %v3028_v24, %v3883_v34  ;;  %v631_v9 = vand.u32 4294901760, %v630_v0  ;;  %v434_v36 = vld [vmem:[%s2753_s11 + $0x40] sm:$0xff] }
  0x52   : > { %909 = vmatmul.f32.gmra.mxu1 %v2941_v40  ;;  %1245 = vmatpush.msrb.mxu3 %v2823_v21  ;;  %v3088_v7 = vsub.f32 %v486_v49, %v3077_v54  ;;  %3940 = vst [vmem:[#allocation12_spill] sm:$0xff] %v3097_v25  ;;  %v492_v49 = vsel %vm466_vm0, %v434_v36, 0 }
  0x53   : > { %1478 = vmatpush.msrb.mxu0 %v896_v56  ;;  %1631 = vmatpush.msrb.mxu1 %v2823_v21  ;;  %v758_v21 = vsub.f32 %v3043_v33, %v3869_v43  ;;  %v3073_v56 = vsub.f32 %v534_v45, %v3058_v46  ;;  %v623_v23 = vand.u32 4294901760, %v622_v16  ;;  %v3867_v45 = vand.u32 4294901760, %v3097_v25  ;;  %3941 = vst [vmem:[#allocation13_spill] sm:$0xff] %v3106_v41 }
  0x54   : > { %v3880_v13 = vand.u32 4294901760, %v3088_v7  ;;  %v3112_v16 = vsub.f32 %v489_v6, %v3101_v26  ;;  %v3125_v0 = vand.u32 4294901760, %v492_v49 }
  0x55   : > { %616 = vmatmul.f32.gmra.mxu0 %v615_v15  ;;  %v759_v60 = vand.u32 4294901760, %v758_v21  ;;  %v3868_v20 = vand.u32 4294901760, %v3073_v56  ;;  %v774_v21 = vsub.f32 %v3097_v25, %v3867_v45 }
  0x56   : > { %v3878_v59 = vand.u32 4294901760, %v3112_v16  ;;  %v3136_v36 = vsub.f32 %v492_v49, %v3125_v0 }
  0x57   : > { %v766_v8 = vsub.f32 %v3073_v56, %v3868_v20  ;;  %v775_v6 = vand.u32 4294901760, %v774_v21 }
  0x58   : > { %752 = vmatmul.f32.gmra.mxu2 %v751_v42  ;;  %977 = vmatmul.f32.gmra.mxu3 %v2949_v48  ;;  %v638_v42 = vsub.f32 %v3088_v7, %v3880_v13  ;;  %v3876_v45 = vand.u32 4294901760, %v3136_v36 }
  0x59   : > { %v767_v15 = vand.u32 4294901760, %v766_v8 }
  0x5a   : > { %913 = vmatmul.f32.gmra.mxu1 %v2972_v55  ;;  %v639_v19 = vand.u32 4294901760, %v638_v42  ;;  %v495_v42 = vsel %vm466_vm0, %v435_v29, 0  ;;  %v436_v29 = vld [vmem:[%s2753_s11 + $0x50] sm:$0xff] }
  0x5b   : > { %v3149_v20 = vand.u32 4294901760, %v495_v42 }
  0x5d   : > { %624 = vmatmul.f32.gmra.mxu0 %v623_v23  ;;  %v3121_v23 = vsub.f32 %v540_v35, %v3106_v41  ;;  %v646_v35 = vsub.f32 %v3112_v16, %v3878_v59  ;;  %v1904_v59 = vlaneseq }
  0x5f   : > { %3942 = vst [vmem:[#allocation14_spill] sm:$0xff] %v3121_v23  ;;  %v3871_v8 = vand.u32 4294901760, %v3121_v23 }
  0x60   : > { %760 = vmatmul.f32.gmra.mxu2 %v759_v60  ;;  %981 = vmatmul.f32.gmra.mxu3 %v2981_v63  ;;  %v543_v60 = vsel %vm466_vm0, %v451_v14, 0 }
  0x61   : > { %v782_v14 = vsub.f32 %v3121_v23, %v3871_v8  ;;  %v498_v8 = vsel %vm466_vm0, %v436_v29, 0  ;;  %v437_v29 = vld [vmem:[%s2753_s11 + $0x58] sm:$0xff] }
  0x62   : > { %917 = vmatmul.f32.gmra.mxu1 %v3009_v10  ;;  %v3173_v12 = vand.u32 4294901760, %v498_v8 }
  0x65   : > { %632 = vmatmul.f32.gmra.mxu0 %v631_v9  ;;  %v3130_v9 = vand.u32 4294901760, %v543_v60 }
  0x67   : > { %3943 = vst [vmem:[#allocation15_spill] sm:$0xff] %v3130_v9  ;;  %v3145_v21 = vsub.f32 %v543_v60, %v3130_v9  ;;  %v654_v60 = vsub.f32 %v3136_v36, %v3876_v45 }
  0x68   : > { %768 = vmatmul.f32.gmra.mxu2 %v767_v15  ;;  %985 = vmatmul.f32.gmra.mxu3 %v3019_v11  ;;  %v452_v15 = vld [vmem:[%s2753_s11 + $0xd0] sm:$0xff] }
  0x69   : > { %3944 = vst [vmem:[#allocation16_spill] sm:$0xff] %v3145_v21  ;;  %v546_v49 = vsel %vm466_vm0, %v452_v15, 0  ;;  %v3877_v43 = vand.u32 4294901760, %v3145_v21  ;;  %v453_v15 = vld [vmem:[%s2753_s11 + $0xd8] sm:$0xff]  ;;  %v655_v61 = vand.u32 4294901760, %v654_v60  ;;  %v3184_v60 = vsub.f32 %v498_v8, %v3173_v12 }
  0x6a   : > { %921 = vmatmul.f32.gmra.mxu1 %v3048_v38  ;;  %v3154_v32 = vand.u32 4294901760, %v546_v49 }
  0x6b   : > { %v3886_v8 = vand.u32 4294901760, %v3184_v60 }
  0x6c   : > { %3945 = vst [vmem:[#allocation17_spill] sm:$0xff] %v3154_v32 }
  0x6d   : > { %640 = vmatmul.f32.gmra.mxu0 %v639_v19  ;;  %v647_v19 = vand.u32 4294901760, %v646_v35  ;;  %v3160_v35 = vsub.f32 %v495_v42, %v3149_v20  ;;  %v549_v42 = vsel %vm466_vm0, %v453_v15, 0  ;;  %v454_v15 = vld [vmem:[%s2753_s11 + $0xe0] sm:$0xff] }
  0x6e   : > { %v3178_v45 = vand.u32 4294901760, %v549_v42 }
  0x6f   : > { %v3879_v47 = vand.u32 4294901760, %v3160_v35 }
  0x70   : > { %776 = vmatmul.f32.gmra.mxu2 %v775_v6  ;;  %989 = vmatmul.f32.gmra.mxu3 %v3058_v46  ;;  %v783_v6 = vand.u32 4294901760, %v782_v14  ;;  %v790_v14 = vsub.f32 %v3145_v21, %v3877_v43  ;;  %3947 = vst [vmem:[#allocation19_spill] sm:$0xff] %v3178_v45  ;;  %v501_v43 = vsel %vm466_vm0, %v437_v29, 0  ;;  %v3199_v29 = vshrl.u32 %v1904_v59, 7 }
  0x71   : > { %v3197_v52 = vand.u32 4294901760, %v501_v43  ;;  %v670_v59 = vsub.f32 %v3184_v60, %v3886_v8 }
  0x72   : > { %925 = vmatmul.f32.gmra.mxu1 %v3077_v54  ;;  %2486 = vset.pattern.permute.xlu2 %v3199_v29 }
  0x73   : > { %2484 = vset.pattern.permute.xlu1 %v3199_v29  ;;  %2488 = vset.pattern.permute.xlu0 %v3199_v29  ;;  %v671_v27 = vand.u32 4294901760, %v670_v59 }
  0x75   : > { %648 = vmatmul.f32.gmra.mxu0 %v647_v19  ;;  %v3169_v19 = vsub.f32 %v546_v49, %v3154_v32  ;;  %v662_v49 = vsub.f32 %v3160_v35, %v3879_v47  ;;  %v552_v47 = vsel %vm466_vm0, %v454_v15, 0  ;;  %v455_v15 = vld [vmem:[%s2753_s11 + $0xe8] sm:$0xff] }
  0x76   : > { %v3206_v34 = vand.u32 4294901760, %v552_v47 }
  0x77   : > { %3946 = vst [vmem:[#allocation18_spill] sm:$0xff] %v3169_v19  ;;  %v3882_v44 = vand.u32 4294901760, %v3169_v19  ;;  %v663_v13 = vand.u32 4294901760, %v662_v49  ;;  %v3213_v49 = vsub.f32 %v501_v43, %v3197_v52  ;;  %v555_v43 = vsel %vm466_vm0, %v455_v15, 0  ;;  %v456_v15 = vld [vmem:[%s2753_s11 + $0xf0] sm:$0xff] }
  0x78   : > { %784 = vmatmul.f32.gmra.mxu2 %v783_v6  ;;  %993 = vmatmul.f32.gmra.mxu3 %v3082_v28  ;;  %v791_v6 = vand.u32 4294901760, %v790_v14 }
  0x79   : > { %v798_v14 = vsub.f32 %v3169_v19, %v3882_v44  ;;  %v3894_v8 = vand.u32 4294901760, %v3213_v49  ;;  %v3231_v19 = vand.u32 4294901760, %v555_v43 }
  0x7a   : > { %929 = vmatmul.f32.gmra.mxu1 %v3101_v26 }
  0x7b   : > { %v799_v44 = vand.u32 4294901760, %v798_v14 }
  0x7d   : > { %656 = vmatmul.f32.gmra.mxu0 %v655_v61  ;;  %v3193_v61 = vsub.f32 %v549_v42, %v3178_v45 }
  0x7f   : > { %3948 = vst [vmem:[#allocation20_spill] sm:$0xff] %v3193_v61  ;;  %v3891_v42 = vand.u32 4294901760, %v3193_v61 }
  0x80   : > { %792 = vmatmul.f32.gmra.mxu2 %v791_v6  ;;  %997 = vmatmul.f32.gmra.mxu3 %v3106_v41  ;;  %v438_v6 = vld [vmem:[%s2753_s11 + $0x60] sm:$0xff] }
  0x81   : > { %v504_v5 = vsel %vm466_vm0, %v438_v6, 0  ;;  %v806_v14 = vsub.f32 %v3193_v61, %v3891_v42 }
  0x82   : > { %933 = vmatmul.f32.gmra.mxu1 %v3125_v0  ;;  %v3226_v39 = vand.u32 4294901760, %v504_v5 }
  0x83   : > { %v807_v6 = vand.u32 4294901760, %v806_v14 }
  0x84   : > { %v3237_v59 = vsub.f32 %v504_v5, %v3226_v39  ;;  %v558_v5 = vsel %vm466_vm0, %v456_v15, 0 }
  0x85   : > { %664 = vmatmul.f32.gmra.mxu0 %v663_v13  ;;  %v3222_v13 = vsub.f32 %v552_v47, %v3206_v34  ;;  %v678_v47 = vsub.f32 %v3213_v49, %v3894_v8  ;;  %v3255_v21 = vand.u32 4294901760, %v558_v5 }
  0x86   : > { %v3906_v8 = vand.u32 4294901760, %v3237_v59 }
  0x87   : > { %3949 = vst [vmem:[#allocation21_spill] sm:$0xff] %v3222_v13  ;;  %v3901_v17 = vand.u32 4294901760, %v3222_v13  ;;  %v679_v61 = vand.u32 4294901760, %v678_v47 }
  0x88   : > { %800 = vmatmul.f32.gmra.mxu2 %v799_v44  ;;  %1001 = vmatmul.f32.gmra.mxu3 %v3130_v9  ;;  %v439_v44 = vld [vmem:[%s2753_s11 + $0x68] sm:$0xff]  ;;  %3951 = vst [vmem:[#allocation23_spill] sm:$0xff] %v3255_v21  ;;  %v686_v47 = vsub.f32 %v3237_v59, %v3906_v8 }
  0x89   : > { %v507_v42 = vsel %vm466_vm0, %v439_v44, 0  ;;  %v814_v14 = vsub.f32 %v3222_v13, %v3901_v17  ;;  %v440_v44 = vld [vmem:[%s2753_s11 + $0x70] sm:$0xff] }
  0x8a   : > { %937 = vmatmul.f32.gmra.mxu1 %v3149_v20  ;;  %v3250_v9 = vand.u32 4294901760, %v507_v42  ;;  %v510_v17 = vsel %vm466_vm0, %v440_v44, 0 }
  0x8b   : > { %v3282_v25 = vand.u32 4294901760, %v510_v17 }
  0x8c   : > { %v3268_v15 = vsub.f32 %v507_v42, %v3250_v9  ;;  %v687_v42 = vand.u32 4294901760, %v686_v47 }
  0x8d   : > { %672 = vmatmul.f32.gmra.mxu0 %v671_v27  ;;  %v3246_v27 = vsub.f32 %v555_v43, %v3231_v19  ;;  %v3262_v43 = vld [vmem:[%s423_s13] ss:$0 sm:$0xff]  ;;  %v3293_v47 = vsub.f32 %v510_v17, %v3282_v25  ;;  %s2399_s13 = sshll.u32 %s2618_s27, 8  ;;  %s2212_s27 = scalar_lea.sflag [#allocation4], %s2747_s28 }
  0x8e   : > { %v3917_v28 = vand.u32 4294901760, %v3268_v15 }
  0x8f   : > { %3950 = vst [vmem:[#allocation22_spill] sm:$0xff] %v3246_v27  ;;  %v3952_v13 = vand.u32 4294901760, %v3246_v27 }
  0x90   : > { %808 = vmatmul.f32.gmra.mxu2 %v807_v6  ;;  %1005 = vmatmul.f32.gmra.mxu3 %v3154_v32  ;;  %v815_v6 = vand.u32 4294901760, %v814_v14  ;;  %v457_v14 = vld [vmem:[%s2753_s11 + $0xf8] sm:$0xff] }
  0x91   : > { %v822_v41 = vsub.f32 %v3246_v27, %v3952_v13  ;;  %v561_v8 = vsel %vm466_vm0, %v457_v14, 0 }
  0x92   : > { %941 = vmatmul.f32.gmra.mxu1 %v3173_v12  ;;  %v3287_v13 = vand.u32 4294901760, %v561_v8 }
  0x94   : > { %3954 = vst [vmem:[#allocation25_spill] sm:$0xff] %v3287_v13 }
  0x95   : > { %680 = vmatmul.f32.gmra.mxu0 %v679_v61  ;;  %v3277_v61 = vsub.f32 %v558_v5, %v3255_v21 }
  0x97   : > { %3953 = vst [vmem:[#allocation24_spill] sm:$0xff] %v3277_v61  ;;  %v3918_v46 = vand.u32 4294901760, %v3277_v61 }
  0x98   : > { %816 = vmatmul.f32.gmra.mxu2 %v815_v6  ;;  %1009 = vmatmul.f32.gmra.mxu3 %v3178_v45  ;;  %v441_v6 = vld [vmem:[%s2753_s11 + $0x78] sm:$0xff]  ;;  %v823_v45 = vand.u32 4294901760, %v822_v41  ;;  %s2226_s11 = scalar_lea.hbm %s3864_s7, %s2399_s13 }
  0x99   : > { %v513_v14 = vsel %vm466_vm0, %v441_v6, 0  ;;  %v830_v41 = vsub.f32 %v3277_v61, %v3918_v46 }
  0x9a   : > { %945 = vmatmul.f32.gmra.mxu1 %v3197_v52 }
  0x9b   : > { %v831_v17 = vand.u32 4294901760, %v830_v41 }
  0x9d   : > { %688 = vmatmul.f32.gmra.mxu0 %v687_v42 }
  0x9f   : > { %v1767_v32 = vpop.permute.xlu0 %1766 }
  0xa0   : > { %v1777_v23 = vsub.f32 %v1767_v32, %v3262_v43  ;;  %v694_v32 = vsub.f32 %v3268_v15, %v3917_v28  ;;  %824 = vmatmul.f32.gmra.mxu2 %v823_v45  ;;  %1013 = vmatmul.f32.gmra.mxu3 %v3206_v34  ;;  %v3304_v28 = vand.u32 4294901760, %v513_v14 }
  0xa2   : > { %v1779_v44 = vand.u32 2147483647, %v1777_v23  ;;  %v3301_v23 = vsub.f32 %v561_v8, %v3287_v13  ;;  %v695_v42 = vand.u32 4294901760, %v694_v32  ;;  %949 = vmatmul.f32.gmra.mxu1 %v3226_v39  ;;  %v3312_v46 = vsub.f32 %v513_v14, %v3304_v28 }
  0xa4   : > { %v1781_v5 = vadd.f32 1.0, %v1779_v44  ;;  %3955 = vst [vmem:[#allocation26_spill] sm:$0xff] %v3301_v23  ;;  %v3923_v44 = vand.u32 4294901760, %v3293_v47  ;;  %v3924_v6 = vand.u32 4294901760, %v3301_v23  ;;  %v3925_v27 = vand.u32 4294901760, %v3312_v46 }
  0xa5   : > { %696 = vmatmul.f32.gmra.mxu0 %v695_v42 }
  0xa6   : > { %2507 = vlog2.f32 %v1781_v5  ;;  %v702_v5 = vsub.f32 %v3293_v47, %v3923_v44  ;;  %v838_v41 = vsub.f32 %v3301_v23, %v3924_v6 }
  0xa8   : > { %832 = vmatmul.f32.gmra.mxu2 %v831_v17  ;;  %1017 = vmatmul.f32.gmra.mxu3 %v3231_v19  ;;  %v703_v61 = vand.u32 4294901760, %v702_v5  ;;  %v839_v14 = vand.u32 4294901760, %v838_v41  ;;  %v710_v17 = vsub.f32 %v3312_v46, %v3925_v27 }
  0xaa   : > { %953 = vmatmul.f32.gmra.mxu1 %v3250_v9  ;;  %v711_v5 = vand.u32 4294901760, %v710_v17 }
  0xac   : > { %v2508_v45 = vpop.eup %2507 }
  0xad   : > { %v3314_v8 = vmul.f32 0.6931472, %v2508_v45  ;;  %704 = vmatmul.f32.gmra.mxu0 %v703_v61  ;;  %v3329_v45 = vadd.s32 8, %v3199_v29 }
  0xaf   : > { %v1916_v32 = vperm.slane %v3314_v8, 1  ;;  %v1903_v42 = vperm.slane %v3314_v8, 0  ;;  %v1929_v44 = vperm.slane %v3314_v8, 2  ;;  %v1955_v61 = vperm.slane %v3314_v8, 4 }
  0xb0   : > { %840 = vmatmul.f32.gmra.mxu2 %v839_v14  ;;  %1021 = vmatmul.f32.gmra.mxu3 %v3255_v21 }
  0xb1   : > { %1921 = vperm.xlu2 %2486, %v1916_v32   ;;  %1908 = vperm.xlu1 %2484, %v1903_v42  }
  0xb2   : > { %1934 = vperm.xlu0 %2488, %v1929_v44   ;;  %957 = vmatmul.f32.gmra.mxu1 %v3282_v25 }
  0xb5   : > { %712 = vmatmul.f32.gmra.mxu0 %v711_v5  ;;  %v3956_v5 = vand.u32 4294901760, %v2913_v2 }
  0xb8   : > { %1025 = vmatmul.f32.gmra.mxu3 %v3287_v13  ;;  %1063 = vmatmul.f32.vlgmr.msrb.gmra.mxu2 %v2913_v2  ;;  %v1942_v13 = vperm.slane %v3314_v8, 3  ;;  %v3958_v2 = vand.u32 4294901760, %v2927_v18 }
  0xb9   : > { %2487 = vset.pattern.permute.xlu2 %v3329_v45  ;;  %2485 = vset.pattern.permute.xlu1 %v3329_v45 }
  0xba   : > { %2490 = vset.pattern.permute.xlu0 %v3329_v45  ;;  %961 = vmatmul.f32.gmra.mxu1 %v3304_v28  ;;  %v3340_v41 = vpop.f32.mrf.mxu0 }
  0xbb   : > { %v721_v14 = vpop.f32.mrf.mxu2 }
  0xbd   : > { %1480 = vmatmul.f32.vlgmr.msrb.gmra.mxu0 %v2898_v58 }
  0xbf   : > { %v3343_v17 = vpop.f32.mrf.mxu1 }
  0xc0   : > { %1068 = vmatmul.f32.gmra.mxu2 %v2927_v18  ;;  %1249 = vmatmul.f32.vlgmr.msrb.gmra.mxu3 %v3956_v5  ;;  %v3960_v18 = vand.u32 4294901760, %v2955_v51 }
  0xc1   : > { %1927 = vperm.xlu2 %2487, %v1916_v32   ;;  %1914 = vperm.xlu1 %2485, %v1903_v42  }
  0xc2   : > { %1966 = vperm.xlu0 %2490, %v1955_v61   ;;  %1633 = vmatmul.f32.vlgmr.msrb.gmra.mxu1 %v2898_v58  ;;  %v3350_v32 = vpop.f32.mrf.mxu0 }
  0xc3   : > { %v729_v6 = vpop.f32.mrf.mxu2  ;;  %v966_v27 = vpop.f32.mrf.mxu3 }
  0xc4   : > { %v3353_v42 = vadd.f32 %v966_v27, %v721_v14  ;;  %v1772_v14 = vpop.permute.xlu0 %1771 }
  0xc5   : > { %1484 = vmatmul.f32.gmra.mxu0 %v2915_v4 }
  0xc6   : > { %3957 = vst [vmem:[#allocation27_spill] sm:$0xff] %v3353_v42 }
  0xc7   : > { %v3357_v23 = vpop.f32.mrf.mxu1 }
  0xc8   : > { %1073 = vmatmul.f32.gmra.mxu2 %v2955_v51  ;;  %1255 = vmatmul.f32.gmra.mxu3 %v3958_v2  ;;  %v1778_v2 = vsub.f32 %v1772_v14, %v3262_v43  ;;  %v1968_v51 = vperm.slane %v3314_v8, 5  ;;  %v1994_v43 = vperm.slane %v3314_v8, 7 }
  0xc9   : > { %2489 = vset.pattern.permute.xlu2 %v3199_v29  ;;  %1940 = vperm.xlu1 %2485, %v1929_v44  }
  0xca   : > { %2493 = vset.pattern.permute.xlu0 %v3199_v29  ;;  %1637 = vmatmul.f32.gmra.mxu1 %v2915_v4  ;;  %v3363_v58 = vpop.f32.mrf.mxu0 }
  0xcb   : > { %v737_v44 = vpop.f32.mrf.mxu2  ;;  %v970_v5 = vpop.f32.mrf.mxu3 }
  0xcc   : > { %v3365_v27 = vadd.f32 %v970_v5, %v729_v6 }
  0xcd   : > { %1488 = vmatmul.f32.gmra.mxu0 %v2941_v40 }
  0xce   : > { %3959 = vst [vmem:[#allocation28_spill] sm:$0xff] %v3365_v27  ;;  %v1780_v27 = vand.u32 2147483647, %v1778_v2 }
  0xcf   : > { %v3368_v42 = vpop.f32.mrf.mxu1 }
  0xd0   : > { %1078 = vmatmul.f32.gmra.mxu2 %v2991_v3  ;;  %1261 = vmatmul.f32.gmra.mxu3 %v3960_v18 }
  0xd1   : > { %1947 = vperm.xlu2 %2489, %v1942_v13   ;;  %1953 = vperm.xlu1 %2485, %v1942_v13  }
  0xd2   : > { %1641 = vmatmul.f32.gmra.mxu1 %v2941_v40  ;;  %v3375_v4 = vpop.f32.mrf.mxu0  ;;  %v3961_v40 = vand.u32 4294901760, %v2991_v3  ;;  %1999 = vperm.xlu0 %2493, %v1994_v43   ;;  %v1981_v3 = vperm.slane %v3314_v8, 6 }
  0xd3   : > { %v745_v13 = vpop.f32.mrf.mxu2  ;;  %v974_v6 = vpop.f32.mrf.mxu3 }
  0xd4   : > { %v3378_v5 = vadd.f32 %v974_v6, %v737_v44 }
  0xd5   : > { %1492 = vmatmul.f32.gmra.mxu0 %v2972_v55 }
  0xd7   : > { %v3381_v21 = vpop.f32.mrf.mxu1 }
  0xd8   : > { %1083 = vmatmul.f32.gmra.mxu2 %v3028_v24  ;;  %1267 = vmatmul.f32.gmra.mxu3 %v3961_v40 }
  0xd9   : > { %1960 = vperm.xlu2 %2489, %v1955_v61   ;;  %2491 = vset.pattern.permute.xlu1 %v3199_v29  ;;  %v1782_v61 = vadd.f32 1.0, %v1780_v27  ;;  %v3963_v27 = vand.u32 4294901760, %v3028_v24 }
  0xda   : > { %1645 = vmatmul.f32.gmra.mxu1 %v2972_v55  ;;  %v3390_v44 = vpop.f32.mrf.mxu0  ;;  %2496 = vset.pattern.permute.xlu0 %v3329_v45 }
  0xdb   : > { %v753_v14 = vpop.f32.mrf.mxu2  ;;  %v978_v18 = vpop.f32.mrf.mxu3  ;;  %2509 = vlog2.f32 %v1782_v61 }
  0xdc   : > { %v3392_v2 = vadd.f32 %v978_v18, %v745_v13 }
  0xdd   : > { %1496 = vmatmul.f32.gmra.mxu0 %v3009_v10 }
  0xde   : > { %3962 = vst [vmem:[#allocation29_spill] sm:$0xff] %v3392_v2 }
  0xdf   : > { %v3395_v6 = vpop.f32.mrf.mxu1 }
  0xe0   : > { %1088 = vmatmul.f32.gmra.mxu2 %v3064_v50  ;;  %1273 = vmatmul.f32.gmra.mxu3 %v3963_v27 }
  0xe1   : > { %2492 = vset.pattern.permute.xlu2 %v3329_v45  ;;  %1973 = vperm.xlu1 %2491, %v1968_v51   ;;  %v2510_v55 = vpop.eup %2509 }
  0xe2   : > { %1649 = vmatmul.f32.gmra.mxu1 %v3009_v10  ;;  %v3403_v13 = vpop.f32.mrf.mxu0  ;;  %v3407_v2 = vmul.f32 0.6931472, %v2510_v55 }
  0xe3   : > { %v761_v40 = vpop.f32.mrf.mxu2  ;;  %v982_v61 = vpop.f32.mrf.mxu3 }
  0xe4   : > { %v3405_v18 = vadd.f32 %v982_v61, %v753_v14  ;;  %v2020_v24 = vperm.slane %v3407_v2, 1 }
  0xe5   : > { %1500 = vmatmul.f32.gmra.mxu0 %v3048_v38 }
  0xe6   : > { %3964 = vst [vmem:[#allocation30_spill] sm:$0xff] %v3405_v18  ;;  %2031 = vperm.xlu0 %2496, %v2020_v24   ;;  %v2085_v18 = vperm.slane %v3407_v2, 6 }
  0xe7   : > { %v3410_v8 = vpop.f32.mrf.mxu1 }
  0xe8   : > { %1093 = vmatmul.f32.gmra.mxu2 %v3088_v7 }
  0xe9   : > { %1979 = vperm.xlu2 %2492, %v1968_v51   ;;  %1986 = vperm.xlu1 %2491, %v1981_v3   ;;  %v3965_v51 = vand.u32 4294901760, %v3064_v50  ;;  %v3967_v50 = vand.u32 4294901760, %v3088_v7  ;;  %v3969_v7 = vand.u32 4294901760, %v3112_v16 }
  0xea   : > { %1653 = vmatmul.f32.gmra.mxu1 %v3048_v38  ;;  %v3417_v10 = vpop.f32.mrf.mxu0 }
  0xeb   : > { %1279 = vmatmul.f32.gmra.mxu3 %v3965_v51  ;;  %v769_v14 = vpop.f32.mrf.mxu2  ;;  %v986_v27 = vpop.f32.mrf.mxu3 }
  0xec   : > { %v3420_v55 = vadd.f32 %v986_v27, %v761_v40  ;;  %v2007_v27 = vperm.slane %v3407_v2, 0 }
  0xed   : > { %1504 = vmatmul.f32.gmra.mxu0 %v3077_v54 }
  0xee   : > { %3966 = vst [vmem:[#allocation31_spill] sm:$0xff] %v3420_v55  ;;  %2499 = vset.pattern.permute.xlu0 %v3199_v29 }
  0xef   : > { %v3423_v61 = vpop.f32.mrf.mxu1 }
  0xf0   : > { %1098 = vmatmul.f32.gmra.mxu2 %v3112_v16 }
  0xf1   : > { %1992 = vperm.xlu2 %2492, %v1981_v3   ;;  %2494 = vset.pattern.permute.xlu1 %v3329_v45 }
  0xf2   : > { %1657 = vmatmul.f32.gmra.mxu1 %v3077_v54  ;;  %v3431_v38 = vpop.f32.mrf.mxu0 }
  0xf3   : > { %1285 = vmatmul.f32.gmra.mxu3 %v3967_v50  ;;  %v777_v3 = vpop.f32.mrf.mxu2  ;;  %v990_v40 = vpop.f32.mrf.mxu3 }
  0xf4   : > { %v3433_v51 = vadd.f32 %v990_v40, %v769_v14 }
  0xf5   : > { %1508 = vmatmul.f32.gmra.mxu0 %v3101_v26 }
  0xf6   : > { %3968 = vst [vmem:[#allocation32_spill] sm:$0xff] %v3433_v51  ;;  %v3971_v51 = vand.u32 4294901760, %v3136_v36 }
  0xf7   : > { %v3437_v55 = vpop.f32.mrf.mxu1 }
  0xf8   : > { %1103 = vmatmul.f32.gmra.mxu2 %v3136_v36  ;;  %v2059_v36 = vperm.slane %v3407_v2, 4 }
  0xf9   : > { %2495 = vset.pattern.permute.xlu2 %v3199_v29  ;;  %2005 = vperm.xlu1 %2494, %v1994_v43  }
  0xfa   : > { %1661 = vmatmul.f32.gmra.mxu1 %v3101_v26  ;;  %v3443_v54 = vpop.f32.mrf.mxu0  ;;  %2064 = vperm.xlu0 %2499, %v2059_v36  }
  0xfb   : > { %1291 = vmatmul.f32.gmra.mxu3 %v3969_v7  ;;  %v785_v50 = vpop.f32.mrf.mxu2  ;;  %v994_v43 = vpop.f32.mrf.mxu3 }
  0xfc   : > { %v3445_v14 = vadd.f32 %v994_v43, %v777_v3  ;;  %v2033_v43 = vperm.slane %v3407_v2, 2 }
  0xfd   : > { %1512 = vmatmul.f32.gmra.mxu0 %v3125_v0 }
  0xfe   : > { %3970 = vst [vmem:[#allocation33_spill] sm:$0xff] %v3445_v14  ;;  %v2046_v14 = vperm.slane %v3407_v2, 3 }
  0xff   : > { %v3448_v40 = vpop.f32.mrf.mxu1 }
 0x100   : > { %1108 = vmatmul.f32.gmra.mxu2 %v3160_v35 }
 0x101   : > { %2012 = vperm.xlu2 %2495, %v2007_v27   ;;  %2018 = vperm.xlu1 %2494, %v2007_v27  }
 0x102   : > { %1665 = vmatmul.f32.gmra.mxu1 %v3125_v0  ;;  %v3454_v26 = vpop.f32.mrf.mxu0  ;;  %v3973_v0 = vand.u32 4294901760, %v3160_v35  ;;  %v3975_v35 = vand.u32 4294901760, %v3184_v60  ;;  %2502 = vset.pattern.permute.xlu0 %v3329_v45 }
 0x103   : > { %1297 = vmatmul.f32.gmra.mxu3 %v3971_v51  ;;  %v793_v16 = vpop.f32.mrf.mxu2  ;;  %v998_v7 = vpop.f32.mrf.mxu3 }
 0x104   : > { %v3457_v3 = vadd.f32 %v998_v7, %v785_v50 }
 0x105   : > { %1516 = vmatmul.f32.gmra.mxu0 %v3149_v20 }
 0x106   : > { %3972 = vst [vmem:[#allocation34_spill] sm:$0xff] %v3457_v3 }
 0x107   : > { %v3460_v27 = vpop.f32.mrf.mxu1 }
 0x108   : > { %1113 = vmatmul.f32.gmra.mxu2 %v3184_v60  ;;  %v3976_v60 = vand.u32 4294901760, %v3213_v49 }
 0x109   : > { %2025 = vperm.xlu2 %2495, %v2020_v24   ;;  %2497 = vset.pattern.permute.xlu1 %v3199_v29 }
 0x10a   : > { %1669 = vmatmul.f32.gmra.mxu1 %v3149_v20  ;;  %v3469_v24 = vpop.f32.mrf.mxu0  ;;  %2096 = vperm.xlu0 %2502, %v2085_v18  }
 0x10b   : > { %1303 = vmatmul.f32.gmra.mxu3 %v3973_v0  ;;  %v801_v51 = vpop.f32.mrf.mxu2  ;;  %v1002_v50 = vpop.f32.mrf.mxu3 }
 0x10c   : > { %v3471_v7 = vadd.f32 %v1002_v50, %v793_v16 }
 0x10d   : > { %1520 = vmatmul.f32.gmra.mxu0 %v3173_v12 }
 0x10e   : > { %3974 = vst [vmem:[#allocation35_spill] sm:$0xff] %v3471_v7 }
 0x10f   : > { %v3474_v3 = vpop.f32.mrf.mxu1 }
 0x110   : > { %1118 = vmatmul.f32.gmra.mxu2 %v3213_v49  ;;  %v3978_v49 = vand.u32 4294901760, %v3237_v59 }
 0x111   : > { %2498 = vset.pattern.permute.xlu2 %v3329_v45  ;;  %2038 = vperm.xlu1 %2497, %v2033_v43  }
 0x112   : > { %1673 = vmatmul.f32.gmra.mxu1 %v3173_v12  ;;  %v3482_v20 = vpop.f32.mrf.mxu0 }
 0x113   : > { %1309 = vmatmul.f32.gmra.mxu3 %v3975_v35  ;;  %v809_v16 = vpop.f32.mrf.mxu2  ;;  %v1006_v0 = vpop.f32.mrf.mxu3 }
 0x114   : > { %v3484_v50 = vadd.f32 %v1006_v0, %v801_v51 }
 0x115   : > { %1524 = vmatmul.f32.gmra.mxu0 %v3197_v52 }
 0x117   : > { %v3487_v7 = vpop.f32.mrf.mxu1 }
 0x118   : > { %1123 = vmatmul.f32.gmra.mxu2 %v3237_v59  ;;  %v3980_v59 = vand.u32 4294901760, %v3268_v15 }
 0x119   : > { %2044 = vperm.xlu2 %2498, %v2033_v43   ;;  %2051 = vperm.xlu1 %2497, %v2046_v14  }
 0x11a   : > { %1677 = vmatmul.f32.gmra.mxu1 %v3197_v52  ;;  %v3494_v12 = vpop.f32.mrf.mxu0 }
 0x11b   : > { %1315 = vmatmul.f32.gmra.mxu3 %v3976_v60  ;;  %v817_v43 = vpop.f32.mrf.mxu2  ;;  %v1010_v51 = vpop.f32.mrf.mxu3 }
 0x11c   : > { %v3497_v35 = vadd.f32 %v1010_v51, %v809_v16  ;;  %v2072_v51 = vperm.slane %v3407_v2, 5 }
 0x11d   : > { %1528 = vmatmul.f32.gmra.mxu0 %v3226_v39 }
 0x11e   : > { %3977 = vst [vmem:[#allocation36_spill] sm:$0xff] %v3497_v35 }
 0x11f   : > { %v3500_v0 = vpop.f32.mrf.mxu1 }
 0x120   : > { %1128 = vmatmul.f32.gmra.mxu2 %v3268_v15 }
 0x121   : > { %2057 = vperm.xlu2 %2498, %v2046_v14   ;;  %2500 = vset.pattern.permute.xlu1 %v3329_v45 }
 0x122   : > { %1681 = vmatmul.f32.gmra.mxu1 %v3226_v39  ;;  %v3507_v52 = vpop.f32.mrf.mxu0 }
 0x123   : > { %1321 = vmatmul.f32.gmra.mxu3 %v3978_v49  ;;  %v825_v14 = vpop.f32.mrf.mxu2  ;;  %v1014_v60 = vpop.f32.mrf.mxu3 }
 0x124   : > { %v3509_v16 = vadd.f32 %v1014_v60, %v817_v43 }
 0x125   : > { %1532 = vmatmul.f32.gmra.mxu0 %v3250_v9 }
 0x126   : > { %3979 = vst [vmem:[#allocation37_spill] sm:$0xff] %v3509_v16  ;;  %v3982_v16 = vand.u32 4294901760, %v3293_v47 }
 0x127   : > { %v3513_v35 = vpop.f32.mrf.mxu1 }
 0x128   : > { %1133 = vmatmul.f32.gmra.mxu2 %v3293_v47  ;;  %v3984_v47 = vand.u32 4294901760, %v3312_v46 }
 0x129   : > { %2501 = vset.pattern.permute.xlu2 %v3199_v29  ;;  %2070 = vperm.xlu1 %2500, %v2059_v36  }
 0x12a   : > { %1685 = vmatmul.f32.gmra.mxu1 %v3250_v9  ;;  %v3519_v39 = vpop.f32.mrf.mxu0 }
 0x12b   : > { %1327 = vmatmul.f32.gmra.mxu3 %v3980_v59  ;;  %v833_v49 = vpop.f32.mrf.mxu2  ;;  %v1018_v36 = vpop.f32.mrf.mxu3 }
 0x12c   : > { %v3521_v43 = vadd.f32 %v1018_v36, %v825_v14  ;;  %v2098_v36 = vperm.slane %v3407_v2, 7 }
 0x12d   : > { %1536 = vmatmul.f32.gmra.mxu0 %v3282_v25 }
 0x12e   : > { %3981 = vst [vmem:[#allocation38_spill] sm:$0xff] %v3521_v43 }
 0x12f   : > { %v3524_v60 = vpop.f32.mrf.mxu1 }
 0x130   : > { %1138 = vmatmul.f32.gmra.mxu2 %v3312_v46  ;;  %v903_v46 = vadd.f32 %v3343_v17, %v3340_v41 }
 0x131   : > { %2077 = vperm.xlu2 %2501, %v2072_v51   ;;  %2083 = vperm.xlu1 %2500, %v2072_v51  }
 0x132   : > { %1689 = vmatmul.f32.gmra.mxu1 %v3282_v25  ;;  %v3530_v9 = vpop.f32.mrf.mxu0 }
 0x133   : > { %1333 = vmatmul.f32.gmra.mxu3 %v3982_v16  ;;  %v841_v15 = vpop.f32.mrf.mxu2  ;;  %v1022_v59 = vpop.f32.mrf.mxu3 }
 0x134   : > { %v3533_v14 = vadd.f32 %v1022_v59, %v833_v49 }
 0x135   : > { %1540 = vmatmul.f32.gmra.mxu0 %v3304_v28 }
 0x136   : > { %3983 = vst [vmem:[#allocation39_spill] sm:$0xff] %v3533_v14 }
 0x137   : > { %v3536_v51 = vpop.f32.mrf.mxu1 }
 0x138   : > { %1143 = vmatmul.f32.gmra.mxu2 %v2864_v37 }
 0x139   : > { %2090 = vperm.xlu2 %2501, %v2085_v18   ;;  %2503 = vset.pattern.permute.xlu1 %v3199_v29 }
 0x13a   : > { %1693 = vmatmul.f32.gmra.mxu1 %v3304_v28  ;;  %v1481_v25 = vpop.f32.mrf.mxu0  ;;  %v3986_v28 = vand.u32 4294901760, %v2864_v37  ;;  %v3572_v37 = vld [vmem:[%s3863_s6] ss:$0 sm:$0xff] }
 0x13b   : > { %1339 = vmatmul.f32.gmra.mxu3 %v3984_v47  ;;  %v1026_v29 = vpop.f32.mrf.mxu3  ;;  %v1064_v18 = vpop.f32.mrf.mxu2 }
 0x13c   : > { %v3544_v16 = vadd.f32 %v1026_v29, %v841_v15  ;;  %v3560_v15 = vld [vmem:[%s3551_s30] sm:$0xff] }
 0x13d   : > { %1544 = vmatmul.f32.gmra.mxu0 %v2845_v30  ;;  %v1805_v41 = vperm.slane %v3560_v15, 0 }
 0x13e   : > { %3985 = vst [vmem:[#allocation40_spill] sm:$0xff] %v3544_v16  ;;  %v1909_v16 = vpop.permute.xlu1 %1908 }
 0x13f   : > { %v1634_v49 = vpop.f32.mrf.mxu1  ;;  %v2115_v14 = vmul.f32 %v3572_v37, %v1909_v16  ;;  %v3988_v16 = vand.u32 4294901760, %v2930_v31 }
 0x140   : > { %1148 = vmatmul.f32.gmra.mxu2 %v2910_v1 }
 0x141   : > { %2504 = vset.pattern.permute.xlu2 %v3329_v45  ;;  %2103 = vperm.xlu1 %2503, %v2098_v36   ;;  %v1065_v45 = vadd.f32 %v1064_v18, %v903_v46  ;;  %v3987_v46 = vand.u32 4294901760, %v2910_v1 }
 0x142   : > { %1697 = vmatmul.f32.gmra.mxu1 %v2845_v30  ;;  %v1485_v2 = vpop.f32.mrf.mxu0 }
 0x143   : > { %1345 = vmatmul.f32.gmra.mxu3 %v3986_v28  ;;  %v1069_v59 = vpop.f32.mrf.mxu2  ;;  %v1250_v47 = vpop.f32.mrf.mxu3  ;;  %v3581_v28 = vld [vmem:[%s3567_s10] sm:$0xff] }
 0x144   : > { %v1251_v29 = vadd.f32 %v1250_v47, %v1065_v45 }
 0x145   : > { %1548 = vmatmul.f32.gmra.mxu0 %v2896_v57 }
 0x146   : > { %v1482_v30 = vadd.f32 %v1481_v25, %v1251_v29 }
 0x147   : > { %v1638_v17 = vpop.f32.mrf.mxu1 }
 0x148   : > { %v1635_v18 = vadd.f32 %v1634_v49, %v1482_v30  ;;  %1153 = vmatmul.f32.gmra.mxu2 %v2930_v31  ;;  %v1915_v30 = vpop.permute.xlu1 %1914 }
 0x149   : > { %2109 = vperm.xlu2 %2504, %v2098_v36   ;;  %v907_v36 = vadd.f32 %v3357_v23, %v3350_v32 }
 0x14a   : > { %v1837_v47 = vadd.f32 %v1805_v41, %v1635_v18  ;;  %1701 = vmatmul.f32.gmra.mxu1 %v2896_v57  ;;  %v1489_v25 = vpop.f32.mrf.mxu0 }
 0x14b   : > { %1351 = vmatmul.f32.gmra.mxu3 %v3987_v46  ;;  %v1070_v45 = vadd.f32 %v1069_v59, %v907_v36  ;;  %v1074_v29 = vpop.f32.mrf.mxu2  ;;  %v1256_v43 = vpop.f32.mrf.mxu3  ;;  %v911_v59 = vadd.f32 %v3368_v42, %v3363_v58  ;;  %v2116_v36 = vmul.f32 %v3572_v37, %v1915_v30  ;;  %v1791_v42 = vrot.slane %v3560_v15, 1 }
 0x14c   : > { %v1871_v23 = vadd.f32 %v3581_v28, %v1837_v47 }
 0x14d   : > { %v1257_v32 = vadd.f32 %v1256_v43, %v1070_v45  ;;  %1552 = vmatmul.f32.gmra.mxu0 %v2905_v62  ;;  %v3598_v43 = vld [vmem:[%s3567_s10 + $0x8] sm:$0xff] }
 0x14e   : > { %v2147_v1 = vadd.f32 %v2115_v14, %v1871_v23  ;;  %v1075_v14 = vadd.f32 %v1074_v29, %v911_v59  ;;  %v1922_v29 = vpop.permute.xlu2 %1921 }
 0x14f   : > { %v1486_v49 = vadd.f32 %v1485_v2, %v1257_v32  ;;  %v1642_v46 = vpop.f32.mrf.mxu1  ;;  %v1806_v32 = vperm.slane %v1791_v42, 0  ;;  %v2117_v30 = vmul.f32 %v3572_v37, %v1922_v29 }
 0x150   : > { %2179 = vst [vmem:[%s3591_s17] sm:$0xff] %v2147_v1  ;;  %1158 = vmatmul.f32.gmra.mxu2 %v2967_v53  ;;  %v915_v1 = vadd.f32 %v3381_v21, %v3375_v4 }
 0x151   : > { %v1639_v57 = vadd.f32 %v1638_v17, %v1486_v49 }
 0x152   : > { %1705 = vmatmul.f32.gmra.mxu1 %v2905_v62  ;;  %v1493_v58 = vpop.f32.mrf.mxu0  ;;  %v3989_v62 = vand.u32 4294901760, %v2967_v53  ;;  %v919_v53 = vadd.f32 %v3395_v6, %v3390_v44 }
 0x153   : > { %1357 = vmatmul.f32.gmra.mxu3 %v3988_v16  ;;  %v1838_v2 = vadd.f32 %v1805_v41, %v1639_v57  ;;  %v1079_v18 = vpop.f32.mrf.mxu2  ;;  %v1262_v45 = vpop.f32.mrf.mxu3 }
 0x154   : > { %v1263_v47 = vadd.f32 %v1262_v45, %v1075_v14  ;;  %v1080_v59 = vadd.f32 %v1079_v18, %v915_v1 }
 0x155   : > { %v1872_v17 = vadd.f32 %v3598_v43, %v1838_v2  ;;  %1556 = vmatmul.f32.gmra.mxu0 %v2949_v48 }
 0x156   : > { %v1490_v23 = vadd.f32 %v1489_v25, %v1263_v47  ;;  %v1928_v18 = vpop.permute.xlu2 %1927 }
 0x157   : > { %v2148_v31 = vadd.f32 %v2116_v36, %v1872_v17  ;;  %v1646_v41 = vpop.f32.mrf.mxu1  ;;  %v2118_v45 = vmul.f32 %v3572_v37, %v1928_v18 }
 0x158   : > { %v1643_v49 = vadd.f32 %v1642_v46, %v1490_v23  ;;  %1163 = vmatmul.f32.gmra.mxu2 %v3005_v22 }
 0x159   : > { %2180 = vst [vmem:[%s3591_s17 + $0x8] sm:$0xff] %v2148_v31  ;;  %v1792_v31 = vrot.slane %v3560_v15, 2 }
 0x15a   : > { %v1839_v57 = vadd.f32 %v1806_v32, %v1643_v49  ;;  %1709 = vmatmul.f32.gmra.mxu1 %v2949_v48  ;;  %v1497_v25 = vpop.f32.mrf.mxu0  ;;  %v3990_v48 = vand.u32 4294901760, %v3005_v22  ;;  %v1935_v49 = vpop.permute.xlu0 %1934 }
 0x15b   : > { %1363 = vmatmul.f32.gmra.mxu3 %v3989_v62  ;;  %v1084_v16 = vpop.f32.mrf.mxu2  ;;  %v1268_v14 = vpop.f32.mrf.mxu3  ;;  %v1807_v1 = vperm.slane %v1792_v31, 0 }
 0x15c   : > { %v1873_v2 = vadd.f32 %v3581_v28, %v1839_v57  ;;  %v1269_v21 = vadd.f32 %v1268_v14, %v1080_v59  ;;  %v1085_v17 = vadd.f32 %v1084_v16, %v919_v53  ;;  %v2119_v16 = vmul.f32 %v3572_v37, %v1935_v49  ;;  %v3996_v49 = vld [vmem:[#allocation14_spill] sm:$0xff] }
 0x15d   : > { %1560 = vmatmul.f32.gmra.mxu0 %v2981_v63 }
 0x15e   : > { %v2149_v4 = vadd.f32 %v2117_v30, %v1873_v2  ;;  %v1494_v46 = vadd.f32 %v1493_v58, %v1269_v21 }
 0x15f   : > { %v1650_v36 = vpop.f32.mrf.mxu1 }
 0x160   : > { %2181 = vst [vmem:[%s3591_s17 + $0x10] sm:$0xff] %v2149_v4  ;;  %v1647_v42 = vadd.f32 %v1646_v41, %v1494_v46  ;;  %1168 = vmatmul.f32.gmra.mxu2 %v3043_v33 }
 0x162   : > { %v1840_v47 = vadd.f32 %v1806_v32, %v1647_v42  ;;  %1713 = vmatmul.f32.gmra.mxu1 %v2981_v63  ;;  %v1501_v58 = vpop.f32.mrf.mxu0  ;;  %v923_v32 = vadd.f32 %v3410_v8, %v3403_v13  ;;  %v3991_v63 = vand.u32 4294901760, %v3043_v33  ;;  %v3992_v8 = vld [vmem:[#allocation10_spill] sm:$0xff]  ;;  %v927_v33 = vadd.f32 %v3423_v61, %v3417_v10  ;;  %v3993_v42 = vld [vmem:[#allocation12_spill] sm:$0xff] }
 0x163   : > { %1369 = vmatmul.f32.gmra.mxu3 %v3990_v48  ;;  %v1089_v23 = vpop.f32.mrf.mxu2  ;;  %v1274_v44 = vpop.f32.mrf.mxu3 }
 0x164   : > { %v1874_v6 = vadd.f32 %v3598_v43, %v1840_v47  ;;  %v1275_v29 = vadd.f32 %v1274_v44, %v1085_v17  ;;  %v1090_v59 = vadd.f32 %v1089_v23, %v923_v32  ;;  %v1941_v48 = vpop.permute.xlu1 %1940  ;;  %v1793_v47 = vrot.slane %v3560_v15, 3  ;;  %v3995_v44 = vld [vmem:[#allocation11_spill] sm:$0xff]  ;;  %v1948_v32 = vpop.permute.xlu2 %1947 }
 0x165   : > { %1564 = vmatmul.f32.gmra.mxu0 %v3019_v11  ;;  %v2120_v18 = vmul.f32 %v3572_v37, %v1941_v48  ;;  %v1794_v48 = vrot.slane %v3560_v15, 4 }
 0x166   : > { %v2150_v22 = vadd.f32 %v2118_v45, %v1874_v6  ;;  %v1498_v41 = vadd.f32 %v1497_v25, %v1275_v29  ;;  %v1808_v29 = vperm.slane %v1793_v47, 0  ;;  %v4001_v47 = vld [vmem:[#allocation15_spill] sm:$0xff] }
 0x167   : > { %v1654_v62 = vpop.f32.mrf.mxu1 }
 0x168   : > { %2182 = vst [vmem:[%s3591_s17 + $0x18] sm:$0xff] %v2150_v22  ;;  %v1651_v30 = vadd.f32 %v1650_v36, %v1498_v41  ;;  %1173 = vmatmul.f32.gmra.mxu2 %v3073_v56  ;;  %v931_v41 = vadd.f32 %v3437_v55, %v3431_v38 }
 0x16a   : > { %v1841_v57 = vadd.f32 %v1807_v1, %v1651_v30  ;;  %1717 = vmatmul.f32.gmra.mxu1 %v3019_v11  ;;  %v1505_v25 = vpop.f32.mrf.mxu0  ;;  %v3994_v11 = vand.u32 4294901760, %v3073_v56  ;;  %v2121_v30 = vmul.f32 %v3572_v37, %v1948_v32 }
 0x16b   : > { %1375 = vmatmul.f32.gmra.mxu3 %v3991_v63  ;;  %v1094_v14 = vpop.f32.mrf.mxu2 }
 0x16c   : > { %v1875_v21 = vadd.f32 %v3581_v28, %v1841_v57  ;;  %v1095_v45 = vadd.f32 %v1094_v14, %v927_v33  ;;  %v3998_v14 = vld [vmem:[#allocation13_spill] sm:$0xff]  ;;  %v1954_v33 = vpop.permute.xlu1 %1953 }
 0x16d   : > { %1568 = vmatmul.f32.gmra.mxu0 %v3992_v8 }
 0x16e   : > { %v1280_v2 = vpop.f32.mrf.mxu3  ;;  %v2151_v4 = vadd.f32 %v2119_v16, %v1875_v21 }
 0x16f   : > { %v1281_v13 = vadd.f32 %v1280_v2, %v1090_v59  ;;  %v1658_v36 = vpop.f32.mrf.mxu1 }
 0x170   : > { %2183 = vst [vmem:[%s3591_s17 + $0x20] sm:$0xff] %v2151_v4  ;;  %1178 = vmatmul.f32.gmra.mxu2 %v3993_v42 }
 0x171   : > { %v1502_v46 = vadd.f32 %v1501_v58, %v1281_v13 }
 0x172   : > { %1721 = vmatmul.f32.gmra.mxu1 %v3992_v8  ;;  %v1509_v31 = vpop.f32.mrf.mxu0  ;;  %v935_v8 = vadd.f32 %v3448_v40, %v3443_v54 }
 0x173   : > { %v1655_v53 = vadd.f32 %v1654_v62, %v1502_v46  ;;  %1381 = vmatmul.f32.gmra.mxu3 %v3994_v11  ;;  %v1099_v58 = vpop.f32.mrf.mxu2  ;;  %v3997_v62 = vand.u32 4294901760, %v3993_v42  ;;  %v3999_v46 = vld [vmem:[#allocation16_spill] sm:$0xff] }
 0x174   : > { %v1100_v63 = vadd.f32 %v1099_v58, %v931_v41 }
 0x175   : > { %v1842_v17 = vadd.f32 %v1807_v1, %v1655_v53  ;;  %1572 = vmatmul.f32.gmra.mxu0 %v3995_v44  ;;  %v2122_v53 = vmul.f32 %v3572_v37, %v1954_v33  ;;  %v4007_v33 = vld [vmem:[#allocation19_spill] sm:$0xff] }
 0x176   : > { %v1286_v10 = vpop.f32.mrf.mxu3 }
 0x177   : > { %v1876_v61 = vadd.f32 %v3598_v43, %v1842_v17  ;;  %v1287_v23 = vadd.f32 %v1286_v10, %v1095_v45  ;;  %v1662_v22 = vpop.f32.mrf.mxu1  ;;  %v1809_v10 = vperm.slane %v1794_v48, 0 }
 0x178   : > { %1183 = vmatmul.f32.gmra.mxu2 %v3996_v49 }
 0x179   : > { %v2152_v56 = vadd.f32 %v2120_v18, %v1876_v61  ;;  %v1506_v6 = vadd.f32 %v1505_v25, %v1287_v23  ;;  %v939_v23 = vadd.f32 %v3460_v27, %v3454_v26 }
 0x17a   : > { %1725 = vmatmul.f32.gmra.mxu1 %v3995_v44  ;;  %v1513_v57 = vpop.f32.mrf.mxu0 }
 0x17b   : > { %2184 = vst [vmem:[%s3591_s17 + $0x28] sm:$0xff] %v2152_v56  ;;  %v1659_v1 = vadd.f32 %v1658_v36, %v1506_v6  ;;  %1387 = vmatmul.f32.gmra.mxu3 %v3997_v62  ;;  %v1104_v16 = vpop.f32.mrf.mxu2  ;;  %v4000_v36 = vand.u32 4294901760, %v3996_v49  ;;  %v4002_v56 = vld [vmem:[#allocation18_spill] sm:$0xff]  ;;  %v4003_v6 = vand.u32 4294901760, %v3999_v46 }
 0x17c   : > { %v1105_v42 = vadd.f32 %v1104_v16, %v935_v8  ;;  %v1795_v8 = vrot.slane %v3560_v15, 5 }
 0x17d   : > { %v1843_v59 = vadd.f32 %v1808_v29, %v1659_v1  ;;  %1576 = vmatmul.f32.gmra.mxu0 %v3998_v14 }
 0x17e   : > { %v1292_v25 = vpop.f32.mrf.mxu3 }
 0x17f   : > { %v1877_v55 = vadd.f32 %v3581_v28, %v1843_v59  ;;  %v1293_v38 = vadd.f32 %v1292_v25, %v1100_v63  ;;  %v1666_v13 = vpop.f32.mrf.mxu1  ;;  %v943_v25 = vadd.f32 %v3474_v3, %v3469_v24 }
 0x180   : > { %1188 = vmatmul.f32.gmra.mxu2 %v3999_v46 }
 0x181   : > { %v2153_v2 = vadd.f32 %v2121_v30, %v1877_v55  ;;  %v1510_v21 = vadd.f32 %v1509_v31, %v1293_v38  ;;  %v4004_v30 = vld [vmem:[#allocation17_spill] sm:$0xff]  ;;  %v4005_v38 = vld [vmem:[#allocation20_spill] sm:$0xff] }
 0x182   : > { %1729 = vmatmul.f32.gmra.mxu1 %v3998_v14  ;;  %v1517_v18 = vpop.f32.mrf.mxu0  ;;  %v4006_v14 = vand.u32 4294901760, %v4002_v56 }
 0x183   : > { %2185 = vst [vmem:[%s3591_s17 + $0x30] sm:$0xff] %v2153_v2  ;;  %v1663_v4 = vadd.f32 %v1662_v22, %v1510_v21  ;;  %1393 = vmatmul.f32.gmra.mxu3 %v4000_v36  ;;  %v1109_v45 = vpop.f32.mrf.mxu2 }
 0x184   : > { %v1110_v41 = vadd.f32 %v1109_v45, %v939_v23 }
 0x185   : > { %v1844_v11 = vadd.f32 %v1808_v29, %v1663_v4  ;;  %1580 = vmatmul.f32.gmra.mxu0 %v4001_v47  ;;  %v1961_v29 = vpop.permute.xlu2 %1960 }
 0x186   : > { %v1298_v54 = vpop.f32.mrf.mxu3  ;;  %v2123_v22 = vmul.f32 %v3572_v37, %v1961_v29  ;;  %v951_v29 = vadd.f32 %v3500_v0, %v3494_v12 }
 0x187   : > { %v1878_v40 = vadd.f32 %v3598_v43, %v1844_v11  ;;  %v1299_v17 = vadd.f32 %v1298_v54, %v1105_v42  ;;  %v1670_v61 = vpop.f32.mrf.mxu1  ;;  %v1810_v11 = vperm.slane %v1795_v8, 0  ;;  %v4008_v54 = vld [vmem:[#allocation21_spill] sm:$0xff] }
 0x188   : > { %1193 = vmatmul.f32.gmra.mxu2 %v4002_v56 }
 0x189   : > { %v2154_v31 = vadd.f32 %v2122_v53, %v1878_v40  ;;  %v1514_v58 = vadd.f32 %v1513_v57, %v1299_v17  ;;  %v1967_v57 = vpop.permute.xlu0 %1966  ;;  %v4009_v40 = vand.u32 4294901760, %v4005_v38  ;;  %v1974_v17 = vpop.permute.xlu1 %1973 }
 0x18a   : > { %1733 = vmatmul.f32.gmra.mxu1 %v4001_v47  ;;  %v1521_v49 = vpop.f32.mrf.mxu0  ;;  %v2125_v47 = vmul.f32 %v3572_v37, %v1974_v17  ;;  %v1797_v17 = vrot.slane %v3560_v15, 7 }
 0x18b   : > { %2186 = vst [vmem:[%s3591_s17 + $0x38] sm:$0xff] %v2154_v31  ;;  %v1667_v44 = vadd.f32 %v1666_v13, %v1514_v58  ;;  %1399 = vmatmul.f32.gmra.mxu3 %v4003_v6  ;;  %v1114_v62 = vpop.f32.mrf.mxu2  ;;  %v2124_v13 = vmul.f32 %v3572_v37, %v1967_v57 }
 0x18c   : > { %v1115_v2 = vadd.f32 %v1114_v62, %v943_v25 }
 0x18d   : > { %v1845_v1 = vadd.f32 %v1809_v10, %v1667_v44  ;;  %1584 = vmatmul.f32.gmra.mxu0 %v4004_v30 }
 0x18e   : > { %v1304_v32 = vpop.f32.mrf.mxu3 }
 0x18f   : > { %v1879_v26 = vadd.f32 %v3581_v28, %v1845_v1  ;;  %v1305_v27 = vadd.f32 %v1304_v32, %v1110_v41  ;;  %v1674_v16 = vpop.f32.mrf.mxu1  ;;  %v4010_v41 = vld [vmem:[#allocation22_spill] sm:$0xff]  ;;  %v4011_v1 = vand.u32 4294901760, %v4008_v54 }
 0x190   : > { %1198 = vmatmul.f32.gmra.mxu2 %v4005_v38  ;;  %v955_v38 = vadd.f32 %v3513_v35, %v3507_v52 }
 0x191   : > { %v2155_v63 = vadd.f32 %v2123_v22, %v1879_v26  ;;  %v1518_v59 = vadd.f32 %v1517_v18, %v1305_v27  ;;  %v947_v18 = vadd.f32 %v3487_v7, %v3482_v20  ;;  %v1796_v26 = vrot.slane %v3560_v15, 6 }
 0x192   : > { %1737 = vmatmul.f32.gmra.mxu1 %v4004_v30  ;;  %v1525_v4 = vpop.f32.mrf.mxu0 }
 0x193   : > { %2187 = vst [vmem:[%s3591_s17 + $0x40] sm:$0xff] %v2155_v63  ;;  %v1671_v55 = vadd.f32 %v1670_v61, %v1518_v59  ;;  %1405 = vmatmul.f32.gmra.mxu3 %v4006_v14  ;;  %v1119_v46 = vpop.f32.mrf.mxu2  ;;  %v1811_v25 = vperm.slane %v1796_v26, 0 }
 0x194   : > { %v1120_v31 = vadd.f32 %v1119_v46, %v947_v18  ;;  %v4015_v18 = vld [vmem:[#allocation26_spill] sm:$0xff] }
 0x195   : > { %v1846_v21 = vadd.f32 %v1809_v10, %v1671_v55  ;;  %1588 = vmatmul.f32.gmra.mxu0 %v4007_v33 }
 0x196   : > { %v1310_v36 = vpop.f32.mrf.mxu3 }
 0x197   : > { %v1880_v3 = vadd.f32 %v3598_v43, %v1846_v21  ;;  %v1311_v24 = vadd.f32 %v1310_v36, %v1115_v2  ;;  %v1678_v48 = vpop.f32.mrf.mxu1  ;;  %v4013_v2 = vand.u32 4294901760, %v4010_v41  ;;  %v1987_v21 = vpop.permute.xlu1 %1986 }
 0x198   : > { %1203 = vmatmul.f32.gmra.mxu2 %v4008_v54 }
 0x199   : > { %v2156_v53 = vadd.f32 %v2124_v13, %v1880_v3  ;;  %v1522_v42 = vadd.f32 %v1521_v49, %v1311_v24  ;;  %v1980_v49 = vpop.permute.xlu2 %1979  ;;  %v2127_v13 = vmul.f32 %v3572_v37, %v1987_v21  ;;  %v4014_v24 = vld [vmem:[#allocation23_spill] sm:$0xff] }
 0x19a   : > { %1741 = vmatmul.f32.gmra.mxu1 %v4007_v33  ;;  %v1529_v10 = vpop.f32.mrf.mxu0  ;;  %v2126_v12 = vmul.f32 %v3572_v37, %v1980_v49 }
 0x19b   : > { %2188 = vst [vmem:[%s3591_s17 + $0x48] sm:$0xff] %v2156_v53  ;;  %v1675_v45 = vadd.f32 %v1674_v16, %v1522_v42  ;;  %1411 = vmatmul.f32.gmra.mxu3 %v4009_v40  ;;  %v1124_v61 = vpop.f32.mrf.mxu2 }
 0x19c   : > { %v1125_v62 = vadd.f32 %v1124_v61, %v951_v29  ;;  %v4017_v61 = vld [vmem:[#allocation25_spill] sm:$0xff]  ;;  %v2000_v29 = vpop.permute.xlu0 %1999 }
 0x19d   : > { %v1847_v58 = vadd.f32 %v1810_v11, %v1675_v45  ;;  %1592 = vmatmul.f32.gmra.mxu0 %v3206_v34 }
 0x19e   : > { %v1316_v23 = vpop.f32.mrf.mxu3 }
 0x19f   : > { %v1881_v7 = vadd.f32 %v3581_v28, %v1847_v58  ;;  %v1317_v20 = vadd.f32 %v1316_v23, %v1120_v31  ;;  %v1682_v6 = vpop.f32.mrf.mxu1 }
 0x1a0   : > { %1208 = vmatmul.f32.gmra.mxu2 %v4010_v41 }
 0x1a1   : > { %v2157_v44 = vadd.f32 %v2125_v47, %v1881_v7  ;;  %v1526_v56 = vadd.f32 %v1525_v4, %v1317_v20  ;;  %v1993_v45 = vpop.permute.xlu2 %1992  ;;  %v1812_v20 = vperm.slane %v1797_v17, 0 }
 0x1a2   : > { %1745 = vmatmul.f32.gmra.mxu1 %v3206_v34  ;;  %v1533_v27 = vpop.f32.mrf.mxu0  ;;  %v4012_v34 = vld [vmem:[#allocation24_spill] sm:$0xff] }
 0x1a3   : > { %2189 = vst [vmem:[%s3591_s17 + $0x50] sm:$0xff] %v2157_v44  ;;  %v1679_v22 = vadd.f32 %v1678_v48, %v1526_v56  ;;  %1417 = vmatmul.f32.gmra.mxu3 %v4011_v1  ;;  %v1129_v30 = vpop.f32.mrf.mxu2  ;;  %v963_v56 = vadd.f32 %v3536_v51, %v3530_v9 }
 0x1a4   : > { %v1130_v8 = vadd.f32 %v1129_v30, %v955_v38 }
 0x1a5   : > { %v1848_v32 = vadd.f32 %v1810_v11, %v1679_v22  ;;  %1596 = vmatmul.f32.gmra.mxu0 %v3231_v19  ;;  %v959_v11 = vadd.f32 %v3524_v60, %v3519_v39  ;;  %v2128_v39 = vmul.f32 %v3572_v37, %v1993_v45 }
 0x1a6   : > { %v1322_v63 = vpop.f32.mrf.mxu3 }
 0x1a7   : > { %v1882_v0 = vadd.f32 %v3598_v43, %v1848_v32  ;;  %v1323_v59 = vadd.f32 %v1322_v63, %v1125_v62  ;;  %v1686_v55 = vpop.f32.mrf.mxu1  ;;  %v2129_v32 = vmul.f32 %v3572_v37, %v2000_v29 }
 0x1a8   : > { %1213 = vmatmul.f32.gmra.mxu2 %v4012_v34 }
 0x1a9   : > { %v2158_v57 = vadd.f32 %v2126_v12, %v1882_v0  ;;  %v1530_v16 = vadd.f32 %v1529_v10, %v1323_v59  ;;  %v2006_v12 = vpop.permute.xlu1 %2005  ;;  %v4019_v0 = vld [vmem:[#allocation27_spill] sm:$0xff] }
 0x1aa   : > { %1749 = vmatmul.f32.gmra.mxu1 %v3231_v19  ;;  %v1537_v46 = vpop.f32.mrf.mxu0  ;;  %v4016_v19 = vand.u32 4294901760, %v4012_v34 }
 0x1ab   : > { %2190 = vst [vmem:[%s3591_s17 + $0x58] sm:$0xff] %v2158_v57  ;;  %v1683_v14 = vadd.f32 %v1682_v6, %v1530_v16  ;;  %1423 = vmatmul.f32.gmra.mxu3 %v4013_v2  ;;  %v1134_v36 = vpop.f32.mrf.mxu2  ;;  %v4018_v6 = vand.u32 4294901760, %v4015_v18 }
 0x1ac   : > { %v1135_v54 = vadd.f32 %v1134_v36, %v959_v11  ;;  %v2013_v36 = vpop.permute.xlu2 %2012 }
 0x1ad   : > { %v1849_v4 = vadd.f32 %v1811_v25, %v1683_v14  ;;  %1600 = vmatmul.f32.gmra.mxu0 %v4014_v24  ;;  %v2130_v14 = vmul.f32 %v3572_v37, %v2006_v12  ;;  %v4022_v12 = vld [vmem:[#allocation30_spill] sm:$0xff] }
 0x1ae   : > { %v1328_v3 = vpop.f32.mrf.mxu3 }
 0x1af   : > { %v1883_v35 = vadd.f32 %v3581_v28, %v1849_v4  ;;  %v1329_v52 = vadd.f32 %v1328_v3, %v1130_v8  ;;  %v1690_v42 = vpop.f32.mrf.mxu1  ;;  %v4020_v3 = vld [vmem:[#allocation28_spill] sm:$0xff] }
 0x1b0   : > { %1218 = vmatmul.f32.gmra.mxu2 %v4015_v18 }
 0x1b1   : > { %v2159_v33 = vadd.f32 %v2127_v13, %v1883_v35  ;;  %v1534_v53 = vadd.f32 %v1533_v27, %v1329_v52 }
 0x1b2   : > { %1753 = vmatmul.f32.gmra.mxu1 %v4014_v24  ;;  %v1541_v47 = vpop.f32.mrf.mxu0 }
 0x1b3   : > { %2191 = vst [vmem:[%s3591_s17 + $0x60] sm:$0xff] %v2159_v33  ;;  %v1687_v48 = vadd.f32 %v1686_v55, %v1534_v53  ;;  %1429 = vmatmul.f32.gmra.mxu3 %v4016_v19  ;;  %v1139_v31 = vpop.f32.mrf.mxu2 }
 0x1b4   : > { %v1140_v22 = vadd.f32 %v1139_v31, %v963_v56 }
 0x1b5   : > { %v1850_v40 = vadd.f32 %v1811_v25, %v1687_v48  ;;  %1604 = vmatmul.f32.gmra.mxu0 %v4017_v61  ;;  %v3742_v25 = vld [vmem:[%s3551_s30 + $0x8] sm:$0xff]  ;;  %s2229_s30 = sshll.u32 %s2226_s11, 4  ;;  %s2230_s30 = int_to_ptr.hbm [resolvable:$true] %s2229_s30 }
 0x1b6   : > { %v1334_v58 = vpop.f32.mrf.mxu3  ;;  %v1813_v8 = vperm.slane %v3742_v25, 0  ;;  %v1798_v31 = vrot.slane %v3742_v25, 1  ;;  %s2558_s12 = sshra.s32 %s2230_s30, 4  ;;  %s2559_s12 = int_to_ptr.hbm [resolvable:$true] %s2558_s12 }
 0x1b7   : > { %v1884_v60 = vadd.f32 %v3598_v43, %v1850_v40  ;;  %v1335_v10 = vadd.f32 %v1334_v58, %v1135_v54  ;;  %v1694_v44 = vpop.f32.mrf.mxu1  ;;  %v2019_v40 = vpop.permute.xlu1 %2018  ;;  %s2560_s8 = scalar_lea.hbm %s2559_s12, 256  ;;  %p2565_p8 = scmp.lt.s32.totalorder %s2559_s12, %s3864_s7 }
 0x1b8   : > { %p2561_p5 = scmp.ne.s32.totalorder %s2559_s12, %s2560_s8  ;;  %p2566_p10 = scmp.lt.s32.totalorder %s2564_s18, %s2560_s8 }
 0x1b9   : > { %v2160_v23 = vadd.f32 %v2128_v39, %v1884_v60  ;;  %v1538_v7 = vadd.f32 %v1537_v46, %v1335_v10  ;;  %v2132_v10 = vmul.f32 %v3572_v37, %v2019_v40 }
 0x1ba   : > { %1757 = vmatmul.f32.gmra.mxu1 %v4017_v61  ;;  %v1545_v1 = vpop.f32.mrf.mxu0  ;;  %p2562_p6 = pnand %p2561_p5, %p2724_p9  ;;  %p2567_p13 = por %p2566_p10, %p2565_p8 }
 0x1bb   : > { %2192 = vst [vmem:[%s3591_s17 + $0x68] sm:$0xff] %v2160_v23  ;;  %v1691_v15 = vadd.f32 %v1690_v42, %v1538_v7  ;;  %1435 = vmatmul.f32.gmra.mxu3 %v4018_v6  ;;  %v1144_v49 = vpop.f32.mrf.mxu2  ;;  %v2131_v42 = vmul.f32 %v3572_v37, %v2013_v36  ;;  %v2026_v6 = vpop.permute.xlu2 %2025 }
 0x1bc   : > { %v1145_v59 = vadd.f32 %v1144_v49, %v4019_v0  ;;  %p2563_p7 = pneg %p2562_p6 }
 0x1bd   : > { %v1851_v41 = vadd.f32 %v1812_v20, %v1691_v15 }
 0x1be   : > { %v1340_v62 = vpop.f32.mrf.mxu3  ;;  %p2568_p0 = pnand %p2567_p13, %p2563_p7 }
 0x1bf   : > { %v1885_v26 = vadd.f32 %v3581_v28, %v1851_v41  ;;  %v1341_v9 = vadd.f32 %v1340_v62, %v1140_v22  ;;  %v1698_v30 = vpop.f32.mrf.mxu1  ;;  %v2133_v62 = vmul.f32 %v3572_v37, %v2026_v6  ;;  %v2039_v36 = vpop.permute.xlu1 %2038 }
 0x1c1   : > { %v2161_v51 = vadd.f32 %v2129_v32, %v1885_v26  ;;  %v1542_v27 = vadd.f32 %v1541_v47, %v1341_v9 }
 0x1c2   : > { %v1549_v16 = vpop.f32.mrf.mxu0 }
 0x1c3   : > { %2193 = vst [vmem:[%s3591_s17 + $0x70] sm:$0xff] %v2161_v51  ;;  %v1695_v63 = vadd.f32 %v1694_v44, %v1542_v27  ;;  %v1149_v55 = vpop.f32.mrf.mxu2  ;;  %v1814_v44 = vperm.slane %v1798_v31, 0  ;;  %v2045_v40 = vpop.permute.xlu2 %2044 }
 0x1c4   : > { %v1150_v35 = vadd.f32 %v1149_v55, %v4020_v3  ;;  %v4023_v3 = vld [vmem:[#allocation31_spill] sm:$0xff] }
 0x1c5   : > { %v1852_v57 = vadd.f32 %v1812_v20, %v1695_v63  ;;  %v2032_v63 = vpop.permute.xlu0 %2031 }
 0x1c6   : > { %v1346_v38 = vpop.f32.mrf.mxu3 }
 0x1c7   : > { %v1886_v34 = vadd.f32 %v3598_v43, %v1852_v57  ;;  %v1347_v2 = vadd.f32 %v1346_v38, %v1145_v59  ;;  %v1702_v4 = vpop.f32.mrf.mxu1  ;;  %v1799_v57 = vrot.slane %v3742_v25, 2 }
 0x1c9   : > { %v2162_v21 = vadd.f32 %v2130_v14, %v1886_v34  ;;  %v1546_v13 = vadd.f32 %v1545_v1, %v1347_v2  ;;  %v2134_v14 = vmul.f32 %v3572_v37, %v2032_v63 }
 0x1ca   : > { %v1553_v24 = vpop.f32.mrf.mxu0 }
 0x1cb   : > { %2194 = vst [vmem:[%s3591_s17 + $0x78] sm:$0xff] %v2162_v21  ;;  %v1699_v46 = vadd.f32 %v1698_v30, %v1546_v13  ;;  %v1154_v33 = vpop.f32.mrf.mxu2 }
 0x1cc   : > { %v1155_v17 = vadd.f32 %v1154_v33, %v3378_v5  ;;  %v4021_v5 = vld [vmem:[#allocation29_spill] sm:$0xff] }
 0x1cd   : > { %v1853_v52 = vadd.f32 %v1813_v8, %v1699_v46 }
 0x1ce   : > { %v1352_v53 = vpop.f32.mrf.mxu3 }
 0x1cf   : > { %v1887_v11 = vadd.f32 %v3581_v28, %v1853_v52  ;;  %v1353_v48 = vadd.f32 %v1352_v53, %v1150_v35  ;;  %v1706_v45 = vpop.f32.mrf.mxu1 }
 0x1d1   : > { %v2163_v18 = vadd.f32 %v2131_v42, %v1887_v11  ;;  %v1550_v19 = vadd.f32 %v1549_v16, %v1353_v48  ;;  %v2135_v42 = vmul.f32 %v3572_v37, %v2039_v36 }
 0x1d2   : > { %v1557_v58 = vpop.f32.mrf.mxu0 }
 0x1d3   : > { %2195 = vst [vmem:[%s3591_s17 + $0x80] sm:$0xff] %v2163_v18  ;;  %v1703_v54 = vadd.f32 %v1702_v4, %v1550_v19  ;;  %v1159_v39 = vpop.f32.mrf.mxu2 }
 0x1d4   : > { %v1160_v29 = vadd.f32 %v1159_v39, %v4021_v5  ;;  %v2052_v5 = vpop.permute.xlu1 %2051 }
 0x1d5   : > { %v1854_v47 = vadd.f32 %v1813_v8, %v1703_v54  ;;  %v1815_v8 = vperm.slane %v1799_v57, 0 }
 0x1d6   : > { %v1358_v60 = vpop.f32.mrf.mxu3 }
 0x1d7   : > { %v1888_v61 = vadd.f32 %v3598_v43, %v1854_v47  ;;  %v1359_v23 = vadd.f32 %v1358_v60, %v1155_v17  ;;  %v1710_v56 = vpop.f32.mrf.mxu1  ;;  %v4024_v17 = vld [vmem:[#allocation32_spill] sm:$0xff] }
 0x1d9   : > { %v2164_v7 = vadd.f32 %v2132_v10, %v1888_v61  ;;  %v1554_v20 = vadd.f32 %v1553_v24, %v1359_v23  ;;  %v2136_v61 = vmul.f32 %v3572_v37, %v2045_v40 }
 0x1da   : > { %v1561_v41 = vpop.f32.mrf.mxu0 }
 0x1db   : > { %2196 = vst [vmem:[%s3591_s17 + $0x88] sm:$0xff] %v2164_v7  ;;  %v1707_v15 = vadd.f32 %v1706_v45, %v1554_v20  ;;  %v1164_v1 = vpop.f32.mrf.mxu2 }
 0x1dc   : > { %v1165_v0 = vadd.f32 %v1164_v1, %v4022_v12  ;;  %v2058_v12 = vpop.permute.xlu2 %2057 }
 0x1dd   : > { %v1855_v22 = vadd.f32 %v1814_v44, %v1707_v15 }
 0x1de   : > { %v1364_v49 = vpop.f32.mrf.mxu3 }
 0x1df   : > { %v1889_v32 = vadd.f32 %v3581_v28, %v1855_v22  ;;  %v1365_v26 = vadd.f32 %v1364_v49, %v1160_v29  ;;  %v1714_v27 = vpop.f32.mrf.mxu1  ;;  %v4025_v29 = vld [vmem:[#allocation33_spill] sm:$0xff] }
 0x1e1   : > { %v2165_v9 = vadd.f32 %v2133_v62, %v1889_v32  ;;  %v1558_v51 = vadd.f32 %v1557_v58, %v1365_v26  ;;  %v1800_v58 = vrot.slane %v3742_v25, 3  ;;  %v2137_v32 = vmul.f32 %v3572_v37, %v2052_v5 }
 0x1e2   : > { %v1565_v16 = vpop.f32.mrf.mxu0 }
 0x1e3   : > { %2197 = vst [vmem:[%s3591_s17 + $0x90] sm:$0xff] %v2165_v9  ;;  %v1711_v30 = vadd.f32 %v1710_v56, %v1558_v51  ;;  %v1169_v55 = vpop.f32.mrf.mxu2  ;;  %v1816_v56 = vperm.slane %v1800_v58, 0  ;;  %v1802_v58 = vrot.slane %v3742_v25, 5 }
 0x1e4   : > { %v1170_v35 = vadd.f32 %v1169_v55, %v4023_v3  ;;  %v2065_v3 = vpop.permute.xlu0 %2064  ;;  %v2078_v5 = vpop.permute.xlu2 %2077 }
 0x1e5   : > { %v1856_v59 = vadd.f32 %v1814_v44, %v1711_v30 }
 0x1e6   : > { %v1370_v38 = vpop.f32.mrf.mxu3 }
 0x1e7   : > { %v1890_v34 = vadd.f32 %v3598_v43, %v1856_v59  ;;  %v1371_v2 = vadd.f32 %v1370_v38, %v1165_v0  ;;  %v1718_v4 = vpop.f32.mrf.mxu1  ;;  %v4026_v0 = vld [vmem:[#allocation34_spill] sm:$0xff] }
 0x1e9   : > { %v2166_v21 = vadd.f32 %v2134_v14, %v1890_v34  ;;  %v1562_v13 = vadd.f32 %v1561_v41, %v1371_v2  ;;  %v2138_v34 = vmul.f32 %v3572_v37, %v2058_v12  ;;  %v4029_v12 = vld [vmem:[#allocation37_spill] sm:$0xff] }
 0x1ea   : > { %v1569_v24 = vpop.f32.mrf.mxu0 }
 0x1eb   : > { %2198 = vst [vmem:[%s3591_s17 + $0x98] sm:$0xff] %v2166_v21  ;;  %v1715_v46 = vadd.f32 %v1714_v27, %v1562_v13  ;;  %v1174_v33 = vpop.f32.mrf.mxu2 }
 0x1ec   : > { %v1175_v47 = vadd.f32 %v1174_v33, %v4024_v17  ;;  %v2071_v17 = vpop.permute.xlu1 %2070 }
 0x1ed   : > { %v1857_v52 = vadd.f32 %v1815_v8, %v1715_v46 }
 0x1ee   : > { %v1376_v53 = vpop.f32.mrf.mxu3 }
 0x1ef   : > { %v1891_v11 = vadd.f32 %v3581_v28, %v1857_v52  ;;  %v1377_v48 = vadd.f32 %v1376_v53, %v1170_v35  ;;  %v1722_v45 = vpop.f32.mrf.mxu1  ;;  %v4027_v35 = vld [vmem:[#allocation35_spill] sm:$0xff] }
 0x1f1   : > { %v2167_v18 = vadd.f32 %v2135_v42, %v1891_v11  ;;  %v1566_v19 = vadd.f32 %v1565_v16, %v1377_v48  ;;  %v1801_v16 = vrot.slane %v3742_v25, 4  ;;  %v2139_v11 = vmul.f32 %v3572_v37, %v2065_v3 }
 0x1f2   : > { %v1573_v39 = vpop.f32.mrf.mxu0 }
 0x1f3   : > { %2199 = vst [vmem:[%s3591_s17 + $0xa0] sm:$0xff] %v2167_v18  ;;  %v1719_v54 = vadd.f32 %v1718_v4, %v1566_v19  ;;  %v1179_v60 = vpop.f32.mrf.mxu2  ;;  %v1817_v4 = vperm.slane %v1801_v16, 0 }
 0x1f4   : > { %v1180_v22 = vadd.f32 %v1179_v60, %v4025_v29 }
 0x1f5   : > { %v1858_v31 = vadd.f32 %v1815_v8, %v1719_v54 }
 0x1f6   : > { %v1382_v10 = vpop.f32.mrf.mxu3 }
 0x1f7   : > { %v1892_v23 = vadd.f32 %v3598_v43, %v1858_v31  ;;  %v1383_v7 = vadd.f32 %v1382_v10, %v1175_v47  ;;  %v1726_v15 = vpop.f32.mrf.mxu1 }
 0x1f9   : > { %v2168_v20 = vadd.f32 %v2136_v61, %v1892_v23  ;;  %v1570_v44 = vadd.f32 %v1569_v24, %v1383_v7  ;;  %v2140_v61 = vmul.f32 %v3572_v37, %v2071_v17 }
 0x1fa   : > { %v1577_v1 = vpop.f32.mrf.mxu0 }
 0x1fb   : > { %2200 = vst [vmem:[%s3591_s17 + $0xa8] sm:$0xff] %v2168_v20  ;;  %v1723_v6 = vadd.f32 %v1722_v45, %v1570_v44  ;;  %v1184_v49 = vpop.f32.mrf.mxu2 }
 0x1fc   : > { %v1185_v59 = vadd.f32 %v1184_v49, %v4026_v0  ;;  %v2141_v49 = vmul.f32 %v3572_v37, %v2078_v5 }
 0x1fd   : > { %v1859_v41 = vadd.f32 %v1816_v56, %v1723_v6 }
 0x1fe   : > { %v1388_v62 = vpop.f32.mrf.mxu3 }
 0x1ff   : > { %v1893_v26 = vadd.f32 %v3581_v28, %v1859_v41  ;;  %v1389_v9 = vadd.f32 %v1388_v62, %v1180_v22  ;;  %v1730_v30 = vpop.f32.mrf.mxu1 }
 0x201   : > { %v2169_v51 = vadd.f32 %v2137_v32, %v1893_v26  ;;  %v1574_v27 = vadd.f32 %v1573_v39, %v1389_v9 }
 0x202   : > { %v1581_v55 = vpop.f32.mrf.mxu0 }
 0x203   : > { %2201 = vst [vmem:[%s3591_s17 + $0xb0] sm:$0xff] %v2169_v51  ;;  %v1727_v63 = vadd.f32 %v1726_v15, %v1574_v27  ;;  %v1189_v38 = vpop.f32.mrf.mxu2 }
 0x204   : > { %v1190_v52 = vadd.f32 %v1189_v38, %v4027_v35 }
 0x205   : > { %v1860_v57 = vadd.f32 %v1816_v56, %v1727_v63  ;;  %v1818_v56 = vperm.slane %v1802_v58, 0  ;;  %v2084_v63 = vpop.permute.xlu1 %2083 }
 0x206   : > { %v1394_v14 = vpop.f32.mrf.mxu3  ;;  %v2142_v38 = vmul.f32 %v3572_v37, %v2084_v63 }
 0x207   : > { %v1894_v2 = vadd.f32 %v3598_v43, %v1860_v57  ;;  %v1395_v21 = vadd.f32 %v1394_v14, %v1185_v59  ;;  %v1734_v46 = vpop.f32.mrf.mxu1  ;;  %v1803_v57 = vrot.slane %v3742_v25, 6 }
 0x209   : > { %v2170_v13 = vadd.f32 %v2138_v34, %v1894_v2  ;;  %v1578_v8 = vadd.f32 %v1577_v1, %v1395_v21 }
 0x20a   : > { %v1585_v33 = vpop.f32.mrf.mxu0 }
 0x20b   : > { %2202 = vst [vmem:[%s3591_s17 + $0xb8] sm:$0xff] %v2170_v13  ;;  %v1731_v36 = vadd.f32 %v1730_v30, %v1578_v8  ;;  %v1194_v53 = vpop.f32.mrf.mxu2  ;;  %v1819_v13 = vperm.slane %v1803_v57, 0 }
 0x20c   : > { %v1195_v47 = vadd.f32 %v1194_v53, %v3484_v50  ;;  %v4028_v50 = vld [vmem:[#allocation36_spill] sm:$0xff] }
 0x20d   : > { %v1861_v24 = vadd.f32 %v1817_v4, %v1731_v36  ;;  %v4030_v36 = vld [vmem:[#allocation38_spill] sm:$0xff] }
 0x20e   : > { %v1400_v42 = vpop.f32.mrf.mxu3 }
 0x20f   : > { %v1895_v48 = vadd.f32 %v3581_v28, %v1861_v24  ;;  %v1401_v18 = vadd.f32 %v1400_v42, %v1190_v52  ;;  %v1738_v54 = vpop.f32.mrf.mxu1  ;;  %v2091_v52 = vpop.permute.xlu2 %2090 }
 0x211   : > { %v2171_v19 = vadd.f32 %v2139_v11, %v1895_v48  ;;  %v1582_v45 = vadd.f32 %v1581_v55, %v1401_v18 }
 0x212   : > { %v1589_v39 = vpop.f32.mrf.mxu0 }
 0x213   : > { %2203 = vst [vmem:[%s3591_s17 + $0xc0] sm:$0xff] %v2171_v19  ;;  %v1735_v40 = vadd.f32 %v1734_v46, %v1582_v45  ;;  %v1199_v60 = vpop.f32.mrf.mxu2  ;;  %v2097_v45 = vpop.permute.xlu0 %2096 }
 0x214   : > { %v1200_v29 = vadd.f32 %v1199_v60, %v4028_v50 }
 0x215   : > { %v1862_v31 = vadd.f32 %v1817_v4, %v1735_v40  ;;  %v4031_v40 = vld [vmem:[#allocation39_spill] sm:$0xff] }
 0x216   : > { %v1406_v10 = vpop.f32.mrf.mxu3 }
 0x217   : > { %v1896_v23 = vadd.f32 %v3598_v43, %v1862_v31  ;;  %v1407_v7 = vadd.f32 %v1406_v10, %v1195_v47  ;;  %v1742_v15 = vpop.f32.mrf.mxu1  ;;  %v1804_v31 = vrot.slane %v3742_v25, 7  ;;  %v2104_v25 = vpop.permute.xlu1 %2103 }
 0x219   : > { %v2172_v20 = vadd.f32 %v2140_v61, %v1896_v23  ;;  %v1586_v44 = vadd.f32 %v1585_v33, %v1407_v7  ;;  %v2143_v33 = vmul.f32 %v3572_v37, %v2091_v52  ;;  %v2511_v37 = vld [vmem:[%s3863_s6] ss:$0 sm:$0xff]  ;;  %v1820_v7 = vperm.slane %v1804_v31, 0 }
 0x21a   : > { %v1593_v26 = vpop.f32.mrf.mxu0 }
 0x21b   : > { %2204 = vst [vmem:[%s3591_s17 + $0xc8] sm:$0xff] %v2172_v20  ;;  %v1739_v6 = vadd.f32 %v1738_v54, %v1586_v44  ;;  %v1204_v41 = vpop.f32.mrf.mxu2 }
 0x21c   : > { %v1205_v0 = vadd.f32 %v1204_v41, %v4029_v12 }
 0x21d   : > { %v1863_v22 = vadd.f32 %v1818_v56, %v1739_v6 }
 0x21e   : > { %v1412_v1 = vpop.f32.mrf.mxu3 }
 0x21f   : > { %v1897_v62 = vadd.f32 %v3581_v28, %v1863_v22  ;;  %v1413_v32 = vadd.f32 %v1412_v1, %v1200_v29  ;;  %v1746_v27 = vpop.f32.mrf.mxu1  ;;  %v2145_v29 = vmul.f32 %v2511_v37, %v2104_v25  ;;  %v2512_v22 = vld [vmem:[%s3567_s10] sm:$0xff] }
 0x221   : > { %v2173_v9 = vadd.f32 %v2141_v49, %v1897_v62  ;;  %v1590_v51 = vadd.f32 %v1589_v39, %v1413_v32 }
 0x222   : > { %v1597_v8 = vpop.f32.mrf.mxu0 }
 0x223   : > { %2205 = vst [vmem:[%s3591_s17 + $0xd0] sm:$0xff] %v2173_v9  ;;  %v1743_v30 = vadd.f32 %v1742_v15, %v1590_v51  ;;  %v1209_v16 = vpop.f32.mrf.mxu2 }
 0x224   : > { %v1210_v3 = vadd.f32 %v1209_v16, %v4030_v36 }
 0x225   : > { %v1864_v59 = vadd.f32 %v1818_v56, %v1743_v30  ;;  %v4032_v56 = vld [vmem:[#allocation40_spill] sm:$0xff] }
 0x226   : > { %v1418_v55 = vpop.f32.mrf.mxu3 }
 0x227   : > { %v1898_v14 = vadd.f32 %v3598_v43, %v1864_v59  ;;  %v1419_v34 = vadd.f32 %v1418_v55, %v1205_v0  ;;  %v1750_v46 = vpop.f32.mrf.mxu1 }
 0x229   : > { %v2174_v2 = vadd.f32 %v2142_v38, %v1898_v14  ;;  %v1594_v21 = vadd.f32 %v1593_v26, %v1419_v34  ;;  %v2110_v26 = vpop.permute.xlu2 %2109 }
 0x22a   : > { %v1601_v54 = vpop.f32.mrf.mxu0  ;;  %v2146_v51 = vmul.f32 %v2511_v37, %v2110_v26 }
 0x22b   : > { %2206 = vst [vmem:[%s3591_s17 + $0xd8] sm:$0xff] %v2174_v2  ;;  %v1747_v4 = vadd.f32 %v1746_v27, %v1594_v21  ;;  %v1214_v11 = vpop.f32.mrf.mxu2  ;;  %v2513_v27 = vld [vmem:[%s3567_s10 + $0x8] sm:$0xff] }
 0x22c   : > { %v1215_v17 = vadd.f32 %v1214_v11, %v4031_v40 }
 0x22d   : > { %v1865_v35 = vadd.f32 %v1819_v13, %v1747_v4 }
 0x22e   : > { %v1424_v24 = vpop.f32.mrf.mxu3 }
 0x22f   : > { %v1899_v53 = vadd.f32 %v3581_v28, %v1865_v35  ;;  %v1425_v42 = vadd.f32 %v1424_v24, %v1210_v3  ;;  %v1754_v39 = vpop.f32.mrf.mxu1  ;;  %v2144_v28 = vmul.f32 %v2511_v37, %v2097_v45 }
 0x231   : > { %v2175_v48 = vadd.f32 %v2143_v33, %v1899_v53  ;;  %v1598_v18 = vadd.f32 %v1597_v8, %v1425_v42 }
 0x232   : > { %v1605_v50 = vpop.f32.mrf.mxu0 }
 0x233   : > { %2207 = vst [vmem:[%s3591_s17 + $0xe0] sm:$0xff] %v2175_v48  ;;  %v1751_v19 = vadd.f32 %v1750_v46, %v1598_v18  ;;  %v1219_v20 = vpop.f32.mrf.mxu2 }
 0x234   : > { %v1220_v15 = vadd.f32 %v1219_v20, %v4032_v56 }
 0x235   : > { %v1866_v47 = vadd.f32 %v1819_v13, %v1751_v19 }
 0x236   : > { %v1430_v58 = vpop.f32.mrf.mxu3 }
 0x237   : > { %v1900_v60 = vadd.f32 %v3598_v43, %v1866_v47  ;;  %v1431_v10 = vadd.f32 %v1430_v58, %v1215_v17  ;;  %v1758_v1 = vpop.f32.mrf.mxu1 }
 0x239   : > { %v2176_v61 = vadd.f32 %v2144_v28, %v1900_v60  ;;  %v1602_v23 = vadd.f32 %v1601_v54, %v1431_v10 }
 0x23b   : > { %2208 = vst [vmem:[%s3591_s17 + $0xe8] sm:$0xff] %v2176_v61  ;;  %v1755_v44 = vadd.f32 %v1754_v39, %v1602_v23 }
 0x23d   : > { %v1867_v6 = vadd.f32 %v1820_v7, %v1755_v44 }
 0x23e   : > { %v1436_v5 = vpop.f32.mrf.mxu3 }
 0x23f   : > { %v1901_v43 = vadd.f32 %v2512_v22, %v1867_v6  ;;  %v1437_v41 = vadd.f32 %v1436_v5, %v1220_v15 }
 0x241   : > { %v2177_v49 = vadd.f32 %v2145_v29, %v1901_v43  ;;  %v1606_v62 = vadd.f32 %v1605_v50, %v1437_v41 }
 0x243   : > { %2209 = vst [vmem:[%s3591_s17 + $0xf0] sm:$0xff] %v2177_v49  ;;  %v1759_v32 = vadd.f32 %v1758_v1, %v1606_v62 }
 0x245   : > { %v1868_v9 = vadd.f32 %v1820_v7, %v1759_v32 }
 0x247   : > { %v1902_v30 = vadd.f32 %v2513_v27, %v1868_v9 }
 0x249   : > { %v2178_v63 = vadd.f32 %v2146_v51, %v1902_v30 }
 0x24b   : > { %2210 = vst [vmem:[%s3591_s17 + $0xf8] sm:$0xff] %v2178_v63 }
 0x24c   : > { %2571 = shalt.err (!%p2568_p0)
}
 0x24d   : > { %s2631_s28 = smov 128   ;;  %s2632_s10 = smov 8  }
 0x24e   : > { %2418 = dma.vmem_to_hbm [thread:$0]  (%p2724_p9), %s2228_s9, 4096, %s2230_s30, %s2212_s27, %s2631_s28, %s2631_s28, %s2632_s10  }
 0x24f PF: > { %s2244_s17 = sand.u32 1, %s2606_s24   ;;  %p2425_p1 = pnand %p2377_p12, %p2731_p11 }
 0x250   : > { %s2245_s22 = scalar_lea.sflag [#allocation4], %s2244_s17 }
 0x251   : > { %p2426_p2 = pneg %p2425_p1 }
 0x253   : > { %2601 = dma.done.wait (%p2426_p2), %s2245_s22, 4096  }
 0x254   : > { %2603 = vsyncadd (%p2426_p2), %s2245_s22, 4294963200  ;;  %s23_s29 = sadd.s32 1, %s2626_s29   ;;  %s4033_s27 = sld [smem:[#allocation8_spill]] }
 0x255   : > { %p20_p3 = scmp.ge.s32.totalorder %s23_s29, 4   ;;  %s4034_s28 = sld [smem:[#allocation9_spill]] }
 0x256   : > { %s4035_s24 = smov %s2610_s25  ;;  %s4036_s25 = smov %s2614_s26 }
 0x257   : > { %s4037_s26 = smov %s2729_s15  ;;  %22 = sbr.rel (!%p20_p3) target bundleno = 6 (0x6), region = 105 }
 0x25c   :  { %2251 = vsyncpa [#allocation3], 1 }
 0x25d   :  { %2253 = vsyncpa [#allocation3 + $0x1], 1 }
 0x25e   :  { %2254 = vsyncpa [#allocation4], 1 }
 0x25f   :  { %2256 = vsyncpa [#allocation4 + $0x1], 1 }

</bundles_post_ra>
